<compile_context>
chip_gen: v5e
topology: v5e:2x2
jax: 0.10.0
libtpu: 0.0.40
codegen_flags: <defaults>
</compile_context>

<pallas_src>
import functools

import jax
import jax.numpy as jnp
from jax.experimental import pallas as pl
from jax.experimental.pallas import tpu as pltpu

HIDDEN = 512
NEG_SLOPE = 0.01  # nn.LeakyReLU() default negative_slope


def _round_up(n, m):
    return ((n + m - 1) // m) * m


def _pick_act_dtype():
    """bf16 VALU exists on v6e/v7x; older gens do the epilogue in f32."""
    try:
        kind = jax.devices()[0].device_kind.lower()
    except Exception:
        kind = ""
    return jnp.bfloat16 if any(t in kind for t in ("v6", "v7", "7x")) else jnp.float32


def _leaky_relu(a):
    # max(x, 0.01*x) == LeakyReLU(x) exactly (slope in (0,1)); mul+max only.
    return jnp.maximum(a, NEG_SLOPE * a)


def mlp_kernel(x_ref, w1_ref, b1_ref, w2_ref, b2_ref, w3_ref, b3_ref,
               w4_ref, b4_ref, o_ref, *, act_dtype):
    # Matmuls: bf16 x bf16 -> f32 accumulation on the MXU.
    # Bias add in f32; LeakyReLU in act_dtype (bf16 on v6e/v7x, f32 on v5e).
    def act(h):
        return _leaky_relu(h.astype(act_dtype)).astype(jnp.bfloat16)

    x = x_ref[...]                                                   # bf16
    h = jnp.dot(x, w1_ref[...], preferred_element_type=jnp.float32) + b1_ref[...]
    h = act(h)
    h = jnp.dot(h, w2_ref[...], preferred_element_type=jnp.float32) + b2_ref[...]
    h = act(h)
    h = jnp.dot(h, w3_ref[...], preferred_element_type=jnp.float32) + b3_ref[...]
    h = act(h)
    out = jnp.dot(h, w4_ref[...], preferred_element_type=jnp.float32) + b4_ref[...]
    o_ref[...] = out.astype(o_ref.dtype)


def mlp_forward(x, params, *, batch_tile=1024):
    """x: (B, in_channels) float32. params: dict of f32 weights/biases.

    Weights are stored as (in, out) so the kernel computes y = x @ W + b,
    equivalent to PyTorch's x @ W_t.T + b.
    """
    B, Cin = x.shape
    Cout = params["w4"].shape[1]
    out_dtype = x.dtype

    # --- contraction-dim lane padding: only when Cin is large and misaligned
    w1 = params["w1"]
    Cin_k = Cin
    if Cin > 128 and Cin % 128 != 0:
        Cin_k = _round_up(Cin, 128)
        x = jnp.pad(x, ((0, 0), (0, Cin_k - Cin)))
        w1 = jnp.pad(w1, ((0, Cin_k - Cin), (0, 0)))

    # --- lane-dense output only when it pays for itself (Cout >= 64)
    w4, b4 = params["w4"], params["b4"]
    Cout_p = Cout
    if Cout % 128 != 0 and Cout >= 64:
        Cout_p = _round_up(Cout, 128)
        w4 = jnp.pad(w4, ((0, 0), (0, Cout_p - Cout)))
        b4 = jnp.pad(b4, ((0, 0), (0, Cout_p - Cout)))

    # --- batch tiling: tb multiple of 16 sublanes (bf16); force >= 2 grid
    # steps when B is big enough so v7x's second TensorCore gets work.
    tb = _round_up(min(batch_tile, _round_up(B, 16)), 16)
    if B >= 32 and _round_up(B, tb) // tb < 2:
        tb = _round_up((B + 1) // 2, 16)
    Bp = _round_up(B, tb)
    if Bp != B:
        x = jnp.pad(x, ((0, Bp - B), (0, 0)))

    # --- bf16 matmul operands, f32 biases (accuracy is free, size is tiny)
    bf16 = lambda a: a.astype(jnp.bfloat16)
    f32 = lambda a: a.astype(jnp.float32)
    args = (bf16(x),
            bf16(w1), f32(params["b1"]),
            bf16(params["w2"]), f32(params["b2"]),
            bf16(params["w3"]), f32(params["b3"]),
            bf16(w4), f32(b4))

    # Grid-invariant weight/bias blocks: constant index_map -> fetched once,
    # kept VMEM-resident across grid steps (no per-step re-DMA).
    resident = lambda shape: pl.BlockSpec(shape, lambda i: (0, 0))

    kernel = functools.partial(mlp_kernel, act_dtype=_pick_act_dtype())

    out_p = pl.pallas_call(
        kernel,
        # bf16 output: halves HBM writeback + output double-buffer VMEM.
        out_shape=jax.ShapeDtypeStruct((Bp, Cout_p), jnp.bfloat16),
        grid_spec=pltpu.PrefetchScalarGridSpec(
            num_scalar_prefetch=0,
            grid=(Bp // tb,),
            in_specs=[
                pl.BlockSpec((tb, Cin_k), lambda i: (i, 0)),        # x tile
                resident((Cin_k, HIDDEN)), resident((1, HIDDEN)),    # layer 1
                resident((HIDDEN, HIDDEN)), resident((1, HIDDEN)),   # layer 2
                resident((HIDDEN, HIDDEN)), resident((1, HIDDEN)),   # layer 3
                resident((HIDDEN, Cout_p)), resident((1, Cout_p)),   # layer 4
            ],
            out_specs=pl.BlockSpec((tb, Cout_p), lambda i: (i, 0)),
        ),
        compiler_params=pltpu.CompilerParams(
            dimension_semantics=("parallel",),
            vmem_limit_bytes=48 * 1024 * 1024,
        ),
    )(*args)

    # Drop batch / lane padding, restore caller dtype.
    return out_p[:B, :Cout].astype(out_dtype)


def init_params(key, in_channels, out_channels):
    """Deterministic synthetic params (shapes match the nn.Linear layers)."""
    ks = jax.random.split(key, 8)

    def lin(kw, kb, fan_in, fan_out):
        bound = 1.0 / jnp.sqrt(fan_in)
        w = jax.random.uniform(kw, (fan_in, fan_out), jnp.float32, -bound, bound)
        b = jax.random.uniform(kb, (1, fan_out), jnp.float32, -bound, bound)
        return w, b

    w1, b1 = lin(ks[0], ks[1], in_channels, HIDDEN)
    w2, b2 = lin(ks[2], ks[3], HIDDEN, HIDDEN)
    w3, b3 = lin(ks[4], ks[5], HIDDEN, HIDDEN)
    w4, b4 = lin(ks[6], ks[7], HIDDEN, out_channels)
    return dict(w1=w1, b1=b1, w2=w2, b2=b2, w3=w3, b3=b3, w4=w4, b4=b4)


def mlp_reference(x, p):
    """Pure-f32 reference matching the PyTorch module semantics."""
    lrelu = lambda v: jnp.where(v >= 0, v, NEG_SLOPE * v)
    h = lrelu(x @ p["w1"] + p["b1"])
    h = lrelu(h @ p["w2"] + p["b2"])
    h = lrelu(h @ p["w3"] + p["b3"])
    return h @ p["w4"] + p["b4"]


if __name__ == "__main__":
    key = jax.random.PRNGKey(0)
    k_x, k_p = jax.random.split(key)

    # Small test shapes: non-multiple batch exercises padding; Cout=16
    # exercises the unpadded (masked-store) output path.
    B, IN_CH, OUT_CH = 50, 32, 16
    x = jax.random.normal(k_x, (B, IN_CH), jnp.float32)
    params = init_params(k_p, IN_CH, OUT_CH)
    ref = mlp_reference(x, params)

    # Default tile: B=50 < tile -> auto-split into a 2-step parallel grid.
    out_a = jax.block_until_ready(mlp_forward(x, params))
    # Explicit small tile: 4-step parallel grid + batch padding.
    out_b = jax.block_until_ready(mlp_forward(x, params, batch_tile=16))

    for out in (out_a, out_b):
        assert out.shape == (B, OUT_CH)
        # bf16 matmul inputs / bf16 output with f32 accumulation: loosened tol.
        assert jnp.allclose(out, ref, atol=5e-2, rtol=5e-2), "mismatch vs reference"

    print("KERNEL_OK")
</pallas_src>

<mosaic_0001>
module attributes {stable_mosaic.version = 11 : i64} {
  func.func @mlp_kernel(%arg0: i32, %arg1: memref<32x32xbf16, #tpu.memory_space<vmem>>, %arg2: memref<32x512xbf16, #tpu.memory_space<vmem>>, %arg3: memref<1x512xf32, #tpu.memory_space<vmem>>, %arg4: memref<512x512xbf16, #tpu.memory_space<vmem>>, %arg5: memref<1x512xf32, #tpu.memory_space<vmem>>, %arg6: memref<512x512xbf16, #tpu.memory_space<vmem>>, %arg7: memref<1x512xf32, #tpu.memory_space<vmem>>, %arg8: memref<512x16xbf16, #tpu.memory_space<vmem>>, %arg9: memref<1x16xf32, #tpu.memory_space<vmem>>, %arg10: memref<32x16xbf16, #tpu.memory_space<vmem>>) attributes {dimension_semantics = [#tpu.dimension_semantics<parallel>], iteration_bounds = array<i64: 2>, scalar_prefetch = 0 : i64, scratch_operands = 0 : i64, tpu.core_type = #tpu.core_type<tc>, window_params = [{transform_indices = @transform_0, window_bounds = array<i64: 32, 32>}, {pipeline_mode = #tpu.pipeline_mode<synchronous>, transform_indices = @transform_1, window_bounds = array<i64: 32, 512>}, {pipeline_mode = #tpu.pipeline_mode<synchronous>, transform_indices = @transform_2, window_bounds = array<i64: 1, 512>}, {pipeline_mode = #tpu.pipeline_mode<synchronous>, transform_indices = @transform_3, window_bounds = array<i64: 512, 512>}, {pipeline_mode = #tpu.pipeline_mode<synchronous>, transform_indices = @transform_4, window_bounds = array<i64: 1, 512>}, {pipeline_mode = #tpu.pipeline_mode<synchronous>, transform_indices = @transform_5, window_bounds = array<i64: 512, 512>}, {pipeline_mode = #tpu.pipeline_mode<synchronous>, transform_indices = @transform_6, window_bounds = array<i64: 1, 512>}, {pipeline_mode = #tpu.pipeline_mode<synchronous>, transform_indices = @transform_7, window_bounds = array<i64: 512, 16>}, {pipeline_mode = #tpu.pipeline_mode<synchronous>, transform_indices = @transform_8, window_bounds = array<i64: 1, 16>}, {transform_indices = @transform_9, window_bounds = array<i64: 32, 16>}]} {
    %c0 = arith.constant 0 : index
    %c0_0 = arith.constant 0 : index
    %0 = vector.load %arg1[%c0, %c0_0] : memref<32x32xbf16, #tpu.memory_space<vmem>>, vector<32x32xbf16>
    %c0_1 = arith.constant 0 : index
    %c0_2 = arith.constant 0 : index
    %1 = vector.load %arg2[%c0_1, %c0_2] : memref<32x512xbf16, #tpu.memory_space<vmem>>, vector<32x512xbf16>
    %cst = arith.constant dense<0.000000e+00> : vector<32x512xf32>
    %2 = tpu.matmul %0, %1, %cst {dimension_numbers = #tpu.dot_dimension_numbers<[1], [0], [0], [1], [0, 0, 1, 1], [], []>} : vector<32x32xbf16>, vector<32x512xbf16>, vector<32x512xf32> -> vector<32x512xf32>
    %c0_3 = arith.constant 0 : index
    %c0_4 = arith.constant 0 : index
    %3 = vector.load %arg3[%c0_3, %c0_4] : memref<1x512xf32, #tpu.memory_space<vmem>>, vector<1x512xf32>
    %4 = vector.broadcast %3 : vector<1x512xf32> to vector<32x512xf32>
    %5 = arith.addf %2, %4 : vector<32x512xf32>
    %cst_5 = arith.constant 0.00999999977 : f32
    %6 = vector.broadcast %cst_5 : f32 to vector<32x512xf32>
    %7 = arith.mulf %6, %5 : vector<32x512xf32>
    %8 = arith.maximumf %5, %7 : vector<32x512xf32>
    %9 = arith.truncf %8 : vector<32x512xf32> to vector<32x512xbf16>
    %c0_6 = arith.constant 0 : index
    %c0_7 = arith.constant 0 : index
    %10 = vector.load %arg4[%c0_6, %c0_7] : memref<512x512xbf16, #tpu.memory_space<vmem>>, vector<512x512xbf16>
    %cst_8 = arith.constant dense<0.000000e+00> : vector<32x512xf32>
    %11 = tpu.matmul %9, %10, %cst_8 {dimension_numbers = #tpu.dot_dimension_numbers<[1], [0], [0], [1], [0, 0, 1, 1], [], []>} : vector<32x512xbf16>, vector<512x512xbf16>, vector<32x512xf32> -> vector<32x512xf32>
    %c0_9 = arith.constant 0 : index
    %c0_10 = arith.constant 0 : index
    %12 = vector.load %arg5[%c0_9, %c0_10] : memref<1x512xf32, #tpu.memory_space<vmem>>, vector<1x512xf32>
    %13 = vector.broadcast %12 : vector<1x512xf32> to vector<32x512xf32>
    %14 = arith.addf %11, %13 : vector<32x512xf32>
    %cst_11 = arith.constant 0.00999999977 : f32
    %15 = vector.broadcast %cst_11 : f32 to vector<32x512xf32>
    %16 = arith.mulf %15, %14 : vector<32x512xf32>
    %17 = arith.maximumf %14, %16 : vector<32x512xf32>
    %18 = arith.truncf %17 : vector<32x512xf32> to vector<32x512xbf16>
    %c0_12 = arith.constant 0 : index
    %c0_13 = arith.constant 0 : index
    %19 = vector.load %arg6[%c0_12, %c0_13] : memref<512x512xbf16, #tpu.memory_space<vmem>>, vector<512x512xbf16>
    %cst_14 = arith.constant dense<0.000000e+00> : vector<32x512xf32>
    %20 = tpu.matmul %18, %19, %cst_14 {dimension_numbers = #tpu.dot_dimension_numbers<[1], [0], [0], [1], [0, 0, 1, 1], [], []>} : vector<32x512xbf16>, vector<512x512xbf16>, vector<32x512xf32> -> vector<32x512xf32>
    %c0_15 = arith.constant 0 : index
    %c0_16 = arith.constant 0 : index
    %21 = vector.load %arg7[%c0_15, %c0_16] : memref<1x512xf32, #tpu.memory_space<vmem>>, vector<1x512xf32>
    %22 = vector.broadcast %21 : vector<1x512xf32> to vector<32x512xf32>
    %23 = arith.addf %20, %22 : vector<32x512xf32>
    %cst_17 = arith.constant 0.00999999977 : f32
    %24 = vector.broadcast %cst_17 : f32 to vector<32x512xf32>
    %25 = arith.mulf %24, %23 : vector<32x512xf32>
    %26 = arith.maximumf %23, %25 : vector<32x512xf32>
    %27 = arith.truncf %26 : vector<32x512xf32> to vector<32x512xbf16>
    %c0_18 = arith.constant 0 : index
    %c0_19 = arith.constant 0 : index
    %28 = vector.load %arg8[%c0_18, %c0_19] : memref<512x16xbf16, #tpu.memory_space<vmem>>, vector<512x16xbf16>
    %cst_20 = arith.constant dense<0.000000e+00> : vector<32x16xf32>
    %29 = tpu.matmul %27, %28, %cst_20 {dimension_numbers = #tpu.dot_dimension_numbers<[1], [0], [0], [1], [0, 0, 1, 1], [], []>} : vector<32x512xbf16>, vector<512x16xbf16>, vector<32x16xf32> -> vector<32x16xf32>
    %c0_21 = arith.constant 0 : index
    %c0_22 = arith.constant 0 : index
    %30 = vector.load %arg9[%c0_21, %c0_22] : memref<1x16xf32, #tpu.memory_space<vmem>>, vector<1x16xf32>
    %31 = vector.broadcast %30 : vector<1x16xf32> to vector<32x16xf32>
    %32 = arith.addf %29, %31 : vector<32x16xf32>
    %33 = arith.truncf %32 : vector<32x16xf32> to vector<32x16xbf16>
    %c0_23 = arith.constant 0 : index
    %c0_24 = arith.constant 0 : index
    %34 = vector.load %arg10[%c0_23, %c0_24] : memref<32x16xbf16, #tpu.memory_space<vmem>>, vector<32x16xbf16>
    tpu.vector_store %arg10[%c0_23, %c0_24], %33 {strides = array<i32>} : memref<32x16xbf16, #tpu.memory_space<vmem>>, vector<32x16xbf16>,
    return
  }
  func.func @transform_0(%arg0: i32) -> (i32, i32) {
    %c0_i32 = arith.constant 0 : i32
    %c0_i32_0 = arith.constant 0 : i32
    return %arg0, %c0_i32 : i32, i32
  }
  func.func @transform_1(%arg0: i32) -> (i32, i32) {
    %c0_i32 = arith.constant 0 : i32
    %c0_i32_0 = arith.constant 0 : i32
    %c0_i32_1 = arith.constant 0 : i32
    return %c0_i32, %c0_i32_0 : i32, i32
  }
  func.func @transform_2(%arg0: i32) -> (i32, i32) {
    %c0_i32 = arith.constant 0 : i32
    %c0_i32_0 = arith.constant 0 : i32
    %c0_i32_1 = arith.constant 0 : i32
    return %c0_i32, %c0_i32_0 : i32, i32
  }
  func.func @transform_3(%arg0: i32) -> (i32, i32) {
    %c0_i32 = arith.constant 0 : i32
    %c0_i32_0 = arith.constant 0 : i32
    %c0_i32_1 = arith.constant 0 : i32
    return %c0_i32, %c0_i32_0 : i32, i32
  }
  func.func @transform_4(%arg0: i32) -> (i32, i32) {
    %c0_i32 = arith.constant 0 : i32
    %c0_i32_0 = arith.constant 0 : i32
    %c0_i32_1 = arith.constant 0 : i32
    return %c0_i32, %c0_i32_0 : i32, i32
  }
  func.func @transform_5(%arg0: i32) -> (i32, i32) {
    %c0_i32 = arith.constant 0 : i32
    %c0_i32_0 = arith.constant 0 : i32
    %c0_i32_1 = arith.constant 0 : i32
    return %c0_i32, %c0_i32_0 : i32, i32
  }
  func.func @transform_6(%arg0: i32) -> (i32, i32) {
    %c0_i32 = arith.constant 0 : i32
    %c0_i32_0 = arith.constant 0 : i32
    %c0_i32_1 = arith.constant 0 : i32
    return %c0_i32, %c0_i32_0 : i32, i32
  }
  func.func @transform_7(%arg0: i32) -> (i32, i32) {
    %c0_i32 = arith.constant 0 : i32
    %c0_i32_0 = arith.constant 0 : i32
    %c0_i32_1 = arith.constant 0 : i32
    return %c0_i32, %c0_i32_0 : i32, i32
  }
  func.func @transform_8(%arg0: i32) -> (i32, i32) {
    %c0_i32 = arith.constant 0 : i32
    %c0_i32_0 = arith.constant 0 : i32
    %c0_i32_1 = arith.constant 0 : i32
    return %c0_i32, %c0_i32_0 : i32, i32
  }
  func.func @transform_9(%arg0: i32) -> (i32, i32) {
    %c0_i32 = arith.constant 0 : i32
    %c0_i32_0 = arith.constant 0 : i32
    return %arg0, %c0_i32 : i32, i32
  }
}

</mosaic_0001>

<bundles_post_ra>
// kernel: tpu_custom_call.1
= control target key start
LH: loop header
LB: loop body
LE: loop exit
PB: predicated region body
PF: predicated region fallthrough
CT: control target
= control target key end

     0   :  { %14 = vsyncpa [#allocation3], 0  ;;  %s5328_s0 = inlined_call_operand.vmem [shape: bf16[64,32], index: 0, kind: input, shape index: {}]   ;;  %s5329_s1 = inlined_call_operand.vmem [shape: bf16[32,512], index: 1, kind: input, shape index: {}]   ;;  %s5330_s2 = inlined_call_operand.vmem [shape: f32[1,512], index: 2, kind: input, shape index: {}]   ;;  %s5331_s3 = inlined_call_operand.hbm [shape: bf16[512,512], index: 3, kind: input, shape index: {}]   ;;  %s5332_s4 = inlined_call_operand.vmem [shape: f32[1,512], index: 4, kind: input, shape index: {}]   ;;  %s5333_s5 = inlined_call_operand.hbm [shape: bf16[512,512], index: 5, kind: input, shape index: {}]   ;;  %s5334_s6 = inlined_call_operand.vmem [shape: f32[1,512], index: 6, kind: input, shape index: {}]   ;;  %s5335_s7 = inlined_call_operand.vmem [shape: bf16[512,16], index: 7, kind: input, shape index: {}]   ;;  %s5336_s8 = inlined_call_operand.vmem [shape: f32[1,16], index: 8, kind: input, shape index: {}]   ;;  %s5337_s9 = inlined_call_operand.vmem [shape: bf16[64,16], index: 9, kind: output, shape index: {}]  }
   0x1   :  { %15 = vsyncpa [#allocation5], 0  ;;  %s4908_s30 = smov 0  }
   0x2 LB: > { %s263_s12 = sshll.u32 %s5331_s3, 4  ;;  %s3233_s13 = sadd.s32 4294967295, %s4852_s30   ;;  %s4852_s30 = sphi %s4908_s30, %s21_s30   ;;  %s264_s12 = int_to_ptr.hbm [resolvable:$true] %s263_s12 }
   0x3   : > { %p3235_p0 = scmp.ge.s32.totalorder %s4852_s30, 1  ;;  %p246_p1 = scmp.lt.s32.totalorder %s4852_s30, 3 }
   0x4   : > { %p4919_p2 = scmp.eq.s32.totalorder %s3233_s13, 0  ;;  %s4854_s16 = smov [#allocation2]  }
   0x5   : > { %p4923_p3 = pnand %p3235_p0, %p246_p1  ;;  %s265_s17 = sshll.u32 %s4854_s16, 4  ;;  %s266_s17 = int_to_ptr.vmem [resolvable:$true] %s265_s17 }
   0x6   : > { %s280_s20 = sshll.u32 %s5333_s5, 4  ;;  %s4855_s21 = smov [#allocation4]   ;;  %s281_s20 = int_to_ptr.hbm [resolvable:$true] %s280_s20 }
   0x7   : > { %p4754_p4 = pneg %p4923_p3  ;;  %s282_s22 = sshll.u32 %s4855_s21, 4  ;;  %s283_s22 = int_to_ptr.vmem [resolvable:$true] %s282_s22 }
   0x8   : > { %s4856_s23 = smov 256   ;;  %s4857_s24 = smov 16  }
   0x9   : > { %p4755_p5 = pnand %p4919_p2, %p4754_p4  ;;  %316 = sbr.rel (%p4923_p3) target bundleno = 829 (0x33d), region = 56 }
   0xb   : > { %4757 = dma.hbm_to_vmem [thread:$0]  (!%p4755_p5), %s264_s12, 16384, %s266_s17, [#allocation3], %s4856_s23, %s4856_s23, %s4857_s24  }
   0xc   : > { %4760 = dma.hbm_to_vmem [thread:$0]  (!%p4755_p5), %s281_s20, 16384, %s283_s22, [#allocation5], %s4856_s23, %s4856_s23, %s4857_s24  }
   0xe   : > { %4843 = dma.done.wait (%p4919_p2), [#allocation3], 16384  }
   0xf   : > { %4845 = vsyncadd (%p4919_p2), [#allocation3], 4294950912 }
  0x10   : > { %4847 = dma.done.wait (%p4919_p2), [#allocation5], 16384  }
  0x11   : > { %4849 = vsyncadd (%p4919_p2), [#allocation5], 4294950912  ;;  %s3242_s25 = sshll.u32 %s3233_s13, 2  ;;  %v3272_v0 = vld [vmem:[%s5329_s1 + $0x20] sm:$0xf]  ;;  %vm443_vm0 = vcmask 261120  }
  0x12   : > { %p359_p6 = scmp.lt.s32.totalorder %s3242_s25, 7  ;;  %v4456_v1 = vld [vmem:[%s5329_s1 + $0x2c] sm:$0xf0]  ;;  %v4454_v2 = vld [vmem:[%s5329_s1 + $0x24] sm:$0xf]  ;;  %vm3150_vm1 = vcmask 125952  }
  0x13   : > { %v3273_v3 = vor.u32 %v4456_v1, %v3272_v0  ;;  %v3274_v4 = vld [vmem:[%s5329_s1 + $0x30] sm:$0xf0]  ;;  %v3280_v5 = vld [vmem:[%s5329_s1 + $0x28] sm:$0xf]  ;;  %v4457_v6 = vld [vmem:[%s5329_s1 + $0x34] sm:$0xf0] }
  0x14   : > { %s5341_s25 = smov (!%p359_p6, %s3242_s25), 7  ;;  %v3277_v7 = vor.u32 %v4454_v2, %v3274_v4  ;;  %v3281_v8 = vor.u32 %v4457_v6, %v3280_v5  ;;  %v4455_v9 = vld [vmem:[%s5329_s1 + $0x2c] sm:$0xf]  ;;  %v3282_v10 = vld [vmem:[%s5329_s1 + $0x38] sm:$0xf0] }
  0x15   : > { %s3243_s26 = sshll.u32 %s5341_s25, 2  ;;  %v3256_v11 = vld [vmem:[%s5329_s1] sm:$0xf]  ;;  %456 = vmatpush.bf16.msra.mxu0 %v3273_v3  ;;  %v3285_v12 = vor.u32 %v4455_v9, %v3282_v10  ;;  %v4452_v13 = vld [vmem:[%s5329_s1 + $0xc] sm:$0xf0] }
  0x16   : > { %s4979_s29 = scalar_lea.vmem %s5328_s0, %s3243_s26  ;;  %v4450_v14 = vld [vmem:[%s5329_s1 + $0x4] sm:$0xf]  ;;  %v3258_v15 = vld [vmem:[%s5329_s1 + $0x10] sm:$0xf0]  ;;  %475 = vmatpush.bf16.msra.mxu1 %v3277_v7  ;;  %494 = vmatpush.bf16.msra.mxu2 %v3281_v8  ;;  %v3257_v16 = vor.u32 %v4452_v13, %v3256_v11  ;;  %v3264_v18 = vld [vmem:[%s5329_s1 + $0x8] sm:$0xf]  ;;  %s368_s28 = scalar_lea.vmem %s5337_s9, %s3243_s26 }
  0x17   : > { %v3261_v17 = vor.u32 %v4450_v14, %v3258_v15  ;;  %v4453_v19 = vld [vmem:[%s5329_s1 + $0x14] sm:$0xf0]  ;;  %v4451_v20 = vld [vmem:[%s5329_s1 + $0xc] sm:$0xf]  ;;  %513 = vmatpush.bf16.msra.mxu3 %v3285_v12  ;;  %v3266_v22 = vld [vmem:[%s5329_s1 + $0x18] sm:$0xf0] }
  0x18   : > { %v3265_v21 = vor.u32 %v4453_v19, %v3264_v18  ;;  %v4448_v23 = vld [vmem:[%s4979_s29] sm:$0xff]  ;;  %v3269_v24 = vor.u32 %v4451_v20, %v3266_v22  ;;  %v4488_v26 = vld [vmem:[#allocation2 + $0xec] sm:$0xf0]  ;;  %v4449_v0 = vld [vmem:[%s4979_s29 + $0x8] sm:$0xff] }
  0x19   : > { %v3408_v25 = vld [vmem:[#allocation2 + $0xe0] sm:$0xf]  ;;  %457 = vmatpush.bf16.msra.mxu0 %v3257_v16  ;;  %v4520_v29 = vld [vmem:[#allocation2 + $0x1ec] sm:$0xf0] }
  0x1a   : > { %v3536_v27 = vld [vmem:[#allocation2 + $0x1e0] sm:$0xf]  ;;  %v3409_v28 = vor.u32 %v4488_v26, %v3408_v25  ;;  %v4484_v31 = vld [vmem:[#allocation2 + $0xcc] sm:$0xf0]  ;;  %476 = vmatpush.bf16.msra.mxu1 %v3261_v17  ;;  %495 = vmatpush.bf16.msra.mxu2 %v3265_v21 }
  0x1b   : > { %v3392_v30 = vld [vmem:[#allocation2 + $0xc0] sm:$0xf]  ;;  %v3537_v32 = vor.u32 %v4520_v29, %v3536_v27  ;;  %v4516_v34 = vld [vmem:[#allocation2 + $0x1cc] sm:$0xf0]  ;;  %514 = vmatpush.bf16.msra.mxu3 %v3269_v24 }
  0x1c   : > { %v3520_v33 = vld [vmem:[#allocation2 + $0x1c0] sm:$0xf]  ;;  %v3393_v36 = vor.u32 %v4484_v31, %v3392_v30  ;;  %v4552_v37 = vld [vmem:[#allocation2 + $0x2ec] sm:$0xf0]  ;;  %3286 = vmatmul.msk.bf16.vlgmr.msra.gmra.mxu0 %vm443_vm0, %v4448_v23 }
  0x1d   : > { %v3664_v35 = vld [vmem:[#allocation2 + $0x2e0] sm:$0xf]  ;;  %1344 = vmatpush.bf16.msrb.mxu0 %v3409_v28  ;;  %v4584_v39 = vld [vmem:[#allocation2 + $0x3ec] sm:$0xf0]  ;;  %v3521_v40 = vor.u32 %v4516_v34, %v3520_v33  ;;  %3288 = vmatmul.msk.bf16.vlgmr.msra.gmra.mxu1 %vm443_vm0, %v4448_v23 }
  0x1e   : > { %v3792_v38 = vld [vmem:[#allocation2 + $0x3e0] sm:$0xf]  ;;  %1363 = vmatpush.bf16.msrb.mxu1 %v3537_v32  ;;  %v3665_v41 = vor.u32 %v4552_v37, %v3664_v35  ;;  %v4480_v44 = vld [vmem:[#allocation2 + $0xac] sm:$0xf0]  ;;  %3290 = vmatmul.msk.bf16.vlgmr.msra.gmra.mxu2 %vm443_vm0, %v4448_v23 }
  0x1f   : > { %v3793_v42 = vor.u32 %v4584_v39, %v3792_v38  ;;  %v3376_v43 = vld [vmem:[#allocation2 + $0xa0] sm:$0xf]  ;;  %v4512_v46 = vld [vmem:[#allocation2 + $0x1ac] sm:$0xf0]  ;;  %3292 = vmatmul.msk.bf16.vlgmr.msra.gmra.mxu3 %vm443_vm0, %v4448_v23 }
  0x20   : > { %v3504_v45 = vld [vmem:[#allocation2 + $0x1a0] sm:$0xf]  ;;  %v4548_v48 = vld [vmem:[#allocation2 + $0x2cc] sm:$0xf0]  ;;  %1382 = vmatpush.bf16.msrb.mxu2 %v3665_v41  ;;  %v3377_v52 = vor.u32 %v4480_v44, %v3376_v43 }
  0x21   : > { %v3648_v47 = vld [vmem:[#allocation2 + $0x2c0] sm:$0xf]  ;;  %v4580_v51 = vld [vmem:[#allocation2 + $0x3cc] sm:$0xf0]  ;;  %1345 = vmatpush.bf16.msrb.mxu0 %v3393_v36  ;;  %1401 = vmatpush.bf16.msrb.mxu3 %v3793_v42  ;;  %v3505_v55 = vor.u32 %v4512_v46, %v3504_v45 }
  0x22   : > { %v3649_v49 = vor.u32 %v4548_v48, %v3648_v47  ;;  %v3776_v50 = vld [vmem:[#allocation2 + $0x3c0] sm:$0xf]  ;;  %1364 = vmatpush.bf16.msrb.mxu1 %v3521_v40  ;;  %v4476_v56 = vld [vmem:[#allocation2 + $0x8c] sm:$0xf0] }
  0x23   : > { %v3777_v53 = vor.u32 %v4580_v51, %v3776_v50  ;;  %v3360_v54 = vld [vmem:[#allocation2 + $0x80] sm:$0xf]  ;;  %v4544_v58 = vld [vmem:[#allocation2 + $0x2ac] sm:$0xf0] }
  0x24   : > { %v3632_v57 = vld [vmem:[#allocation2 + $0x2a0] sm:$0xf]  ;;  %v4508_v60 = vld [vmem:[#allocation2 + $0x18c] sm:$0xf0]  ;;  %1383 = vmatpush.bf16.msrb.mxu2 %v3649_v49  ;;  %v3361_v62 = vor.u32 %v4476_v56, %v3360_v54  ;;  %v4518_v54 = vld [vmem:[#allocation2 + $0x1e4] sm:$0xf] }
  0x25   : > { %v3488_v59 = vld [vmem:[#allocation2 + $0x180] sm:$0xf]  ;;  %v3633_v61 = vor.u32 %v4544_v58, %v3632_v57  ;;  %1346 = vmatpush.bf16.msrb.mxu0 %v3377_v52  ;;  %1402 = vmatpush.bf16.msrb.mxu3 %v3777_v53  ;;  %v4576_v2 = vld [vmem:[#allocation2 + $0x3ac] sm:$0xf0]  ;;  %v4486_v52 = vld [vmem:[#allocation2 + $0xe4] sm:$0xf] }
  0x26   : > { %1365 = vmatpush.bf16.msrb.mxu1 %v3505_v55  ;;  %v3489_v63 = vor.u32 %v4508_v60, %v3488_v59  ;;  %v3760_v1 = vld [vmem:[#allocation2 + $0x3a0] sm:$0xf]  ;;  %v4472_v5 = vld [vmem:[#allocation2 + $0x6c] sm:$0xf0]  ;;  %v3410_v53 = vld [vmem:[#allocation2 + $0xf0] sm:$0xf0] }
  0x27   : > { %v3761_v3 = vor.u32 %v4576_v2, %v3760_v1  ;;  %v3344_v4 = vld [vmem:[#allocation2 + $0x60] sm:$0xf]  ;;  %v4504_v8 = vld [vmem:[#allocation2 + $0x16c] sm:$0xf0]  ;;  %v3413_v55 = vor.u32 %v4486_v52, %v3410_v53  ;;  %v3538_v56 = vld [vmem:[#allocation2 + $0x1f0] sm:$0xf0] }
  0x28   : > { %1384 = vmatpush.bf16.msrb.mxu2 %v3633_v61  ;;  %v3472_v6 = vld [vmem:[#allocation2 + $0x160] sm:$0xf]  ;;  %v3345_v7 = vor.u32 %v4472_v5, %v3344_v4  ;;  %v4540_v11 = vld [vmem:[#allocation2 + $0x28c] sm:$0xf0]  ;;  %v3541_v57 = vor.u32 %v4518_v54, %v3538_v56  ;;  %v3394_v1 = vld [vmem:[#allocation2 + $0xd0] sm:$0xf0] }
  0x29   : > { %1347 = vmatpush.bf16.msrb.mxu0 %v3361_v62  ;;  %1403 = vmatpush.bf16.msrb.mxu3 %v3761_v3  ;;  %v3473_v9 = vor.u32 %v4504_v8, %v3472_v6  ;;  %v3616_v10 = vld [vmem:[#allocation2 + $0x280] sm:$0xf]  ;;  %v4572_v14 = vld [vmem:[#allocation2 + $0x38c] sm:$0xf0]  ;;  %v4514_v2 = vld [vmem:[#allocation2 + $0x1c4] sm:$0xf] }
  0x2a   : > { %1366 = vmatpush.bf16.msrb.mxu1 %v3489_v63  ;;  %v3744_v12 = vld [vmem:[#allocation2 + $0x380] sm:$0xf]  ;;  %v3617_v13 = vor.u32 %v4540_v11, %v3616_v10  ;;  %v4468_v17 = vld [vmem:[#allocation2 + $0x4c] sm:$0xf0]  ;;  %v3522_v4 = vld [vmem:[#allocation2 + $0x1d0] sm:$0xf0] }
  0x2b   : > { %v3745_v15 = vor.u32 %v4572_v14, %v3744_v12  ;;  %v3328_v16 = vld [vmem:[#allocation2 + $0x40] sm:$0xf]  ;;  %v4500_v20 = vld [vmem:[#allocation2 + $0x14c] sm:$0xf0]  ;;  %v3525_v5 = vor.u32 %v4514_v2, %v3522_v4  ;;  %v4550_v6 = vld [vmem:[#allocation2 + $0x2e4] sm:$0xf] }
  0x2c   : > { %3287 = vmatmul.msk.bf16.gmra.mxu0 %vm443_vm0, %v4449_v0  ;;  %1385 = vmatpush.bf16.msrb.mxu2 %v3617_v13  ;;  %v3329_v18 = vor.u32 %v4468_v17, %v3328_v16  ;;  %v3456_v19 = vld [vmem:[#allocation2 + $0x140] sm:$0xf]  ;;  %v4536_v23 = vld [vmem:[#allocation2 + $0x26c] sm:$0xf0]  ;;  %v4582_v8 = vld [vmem:[#allocation2 + $0x3e4] sm:$0xf] }
  0x2d   : > { %3289 = vmatmul.msk.bf16.gmra.mxu1 %vm443_vm0, %v4449_v0  ;;  %1348 = vmatpush.bf16.msrb.mxu0 %v3345_v7  ;;  %v3457_v21 = vor.u32 %v4500_v20, %v3456_v19  ;;  %v3600_v22 = vld [vmem:[#allocation2 + $0x260] sm:$0xf]  ;;  %v4568_v26 = vld [vmem:[#allocation2 + $0x36c] sm:$0xf0]  ;;  %v3666_v7 = vld [vmem:[#allocation2 + $0x2f0] sm:$0xf0] }
  0x2e   : > { %3291 = vmatmul.msk.bf16.gmra.mxu2 %vm443_vm0, %v4449_v0  ;;  %1367 = vmatpush.bf16.msrb.mxu1 %v3473_v9  ;;  %v3601_v24 = vor.u32 %v4536_v23, %v3600_v22  ;;  %v3728_v25 = vld [vmem:[#allocation2 + $0x360] sm:$0xf]  ;;  %v4464_v29 = vld [vmem:[#allocation2 + $0x2c] sm:$0xf0]  ;;  %v3669_v9 = vor.u32 %v4550_v6, %v3666_v7  ;;  %v3794_v10 = vld [vmem:[#allocation2 + $0x3f0] sm:$0xf0] }
  0x2f   : > { %3293 = vmatmul.msk.bf16.gmra.mxu3 %vm443_vm0, %v4449_v0  ;;  %v3729_v27 = vor.u32 %v4568_v26, %v3728_v25  ;;  %v3312_v28 = vld [vmem:[#allocation2 + $0x20] sm:$0xf]  ;;  %v4496_v32 = vld [vmem:[#allocation2 + $0x12c] sm:$0xf0]  ;;  %v4482_v0 = vld [vmem:[#allocation2 + $0xc4] sm:$0xf]  ;;  %v3797_v11 = vor.u32 %v4582_v8, %v3794_v10 }
  0x30   : > { %1404 = vmatpush.bf16.msrb.mxu3 %v3745_v15  ;;  %v3440_v30 = vld [vmem:[#allocation2 + $0x120] sm:$0xf]  ;;  %1386 = vmatpush.bf16.msrb.mxu2 %v3601_v24  ;;  %v3313_v31 = vor.u32 %v4464_v29, %v3312_v28  ;;  %v4532_v35 = vld [vmem:[#allocation2 + $0x24c] sm:$0xf0]  ;;  %v3397_v3 = vor.u32 %v4482_v0, %v3394_v1  ;;  %v4478_v12 = vld [vmem:[#allocation2 + $0xa4] sm:$0xf] }
  0x31   : > { %1349 = vmatpush.bf16.msrb.mxu0 %v3329_v18  ;;  %v3441_v33 = vor.u32 %v4496_v32, %v3440_v30  ;;  %v3584_v34 = vld [vmem:[#allocation2 + $0x240] sm:$0xf]  ;;  %v4564_v38 = vld [vmem:[#allocation2 + $0x34c] sm:$0xf0]  ;;  %v3378_v13 = vld [vmem:[#allocation2 + $0xb0] sm:$0xf0] }
  0x32   : > { %1368 = vmatpush.bf16.msrb.mxu1 %v3457_v21  ;;  %v3712_v36 = vld [vmem:[#allocation2 + $0x340] sm:$0xf]  ;;  %v3585_v37 = vor.u32 %v4532_v35, %v3584_v34  ;;  %v4460_v41 = vld [vmem:[#allocation2 + $0xc] sm:$0xf0]  ;;  %v4510_v14 = vld [vmem:[#allocation2 + $0x1a4] sm:$0xf]  ;;  %v3381_v15 = vor.u32 %v4478_v12, %v3378_v13 }
  0x33   : > { %v3713_v39 = vor.u32 %v4564_v38, %v3712_v36  ;;  %v3296_v40 = vld [vmem:[#allocation2] sm:$0xf]  ;;  %v4492_v44 = vld [vmem:[#allocation2 + $0x10c] sm:$0xf0]  ;;  %v3506_v16 = vld [vmem:[#allocation2 + $0x1b0] sm:$0xf0] }
  0x34   : > { %1405 = vmatpush.bf16.msrb.mxu3 %v3729_v27  ;;  %v3424_v42 = vld [vmem:[#allocation2 + $0x100] sm:$0xf]  ;;  %1387 = vmatpush.bf16.msrb.mxu2 %v3585_v37  ;;  %v3297_v43 = vor.u32 %v4460_v41, %v3296_v40  ;;  %v4528_v47 = vld [vmem:[#allocation2 + $0x22c] sm:$0xf0]  ;;  %v3509_v17 = vor.u32 %v4510_v14, %v3506_v16  ;;  %v4546_v18 = vld [vmem:[#allocation2 + $0x2c4] sm:$0xf] }
  0x35   : > { %1350 = vmatpush.bf16.msrb.mxu0 %v3313_v31  ;;  %v3425_v45 = vor.u32 %v4492_v44, %v3424_v42  ;;  %v3568_v46 = vld [vmem:[#allocation2 + $0x220] sm:$0xf]  ;;  %v4560_v50 = vld [vmem:[#allocation2 + $0x32c] sm:$0xf0]  ;;  %v3650_v19 = vld [vmem:[#allocation2 + $0x2d0] sm:$0xf0] }
  0x36   : > { %1369 = vmatpush.bf16.msrb.mxu1 %v3441_v33  ;;  %v3696_v48 = vld [vmem:[#allocation2 + $0x320] sm:$0xf]  ;;  %v3569_v49 = vor.u32 %v4528_v47, %v3568_v46  ;;  %v4524_v59 = vld [vmem:[#allocation2 + $0x20c] sm:$0xf0]  ;;  %v4578_v20 = vld [vmem:[#allocation2 + $0x3c4] sm:$0xf]  ;;  %v3653_v22 = vor.u32 %v4546_v18, %v3650_v19 }
  0x37   : > { %v3697_v51 = vor.u32 %v4560_v50, %v3696_v48  ;;  %v3552_v58 = vld [vmem:[#allocation2 + $0x200] sm:$0xf]  ;;  %v4556_v62 = vld [vmem:[#allocation2 + $0x30c] sm:$0xf0]  ;;  %v3778_v23 = vld [vmem:[#allocation2 + $0x3d0] sm:$0xf0] }
  0x38   : > { %1406 = vmatpush.bf16.msrb.mxu3 %v3713_v39  ;;  %1388 = vmatpush.bf16.msrb.mxu2 %v3569_v49  ;;  %v3680_v60 = vld [vmem:[#allocation2 + $0x300] sm:$0xf]  ;;  %v3553_v61 = vor.u32 %v4524_v59, %v3552_v58  ;;  %v3781_v24 = vor.u32 %v4578_v20, %v3778_v23  ;;  %v4474_v25 = vld [vmem:[#allocation2 + $0x84] sm:$0xf]  ;;  %v3362_v26 = vld [vmem:[#allocation2 + $0x90] sm:$0xf0] }
  0x39   : > { %1351 = vmatpush.bf16.msrb.mxu0 %v3297_v43  ;;  %v3681_v63 = vor.u32 %v4556_v62, %v3680_v60  ;;  %v383_v21 = vld [vmem:[%s5330_s2] sm:$0xf]  ;;  %v4506_v27 = vld [vmem:[#allocation2 + $0x184] sm:$0xf]  ;;  %v3365_v28 = vor.u32 %v4474_v25, %v3362_v26  ;;  %v3490_v29 = vld [vmem:[#allocation2 + $0x190] sm:$0xf0] }
  0x3a   : > { %1370 = vmatpush.bf16.msrb.mxu1 %v3425_v45  ;;  %v3493_v30 = vor.u32 %v4506_v27, %v3490_v29  ;;  %v4542_v31 = vld [vmem:[#allocation2 + $0x2a4] sm:$0xf]  ;;  %v3634_v32 = vld [vmem:[#allocation2 + $0x2b0] sm:$0xf0]  ;;  %v5015_v34 = vperm.slane %v383_v21, 0  ;;  %v5017_v36 = vperm.slane %v383_v21, 1 }
  0x3b   : > { %v4574_v33 = vld [vmem:[#allocation2 + $0x3a4] sm:$0xf]  ;;  %v3637_v37 = vor.u32 %v4542_v31, %v3634_v32  ;;  %v3762_v38 = vld [vmem:[#allocation2 + $0x3b0] sm:$0xf0]  ;;  %v5025_v58 = vperm.slane %v383_v21, 2  ;;  %v5027_v59 = vperm.slane %v383_v21, 3 }
  0x3c   : > { %1407 = vmatpush.bf16.msrb.mxu3 %v3697_v51  ;;  %1389 = vmatpush.bf16.msrb.mxu2 %v3553_v61  ;;  %v3765_v40 = vor.u32 %v4574_v33, %v3762_v38  ;;  %v4470_v41 = vld [vmem:[#allocation2 + $0x64] sm:$0xf]  ;;  %v3346_v42 = vld [vmem:[#allocation2 + $0x70] sm:$0xf0] }
  0x3d   : > { %1420 = vmatpush.bf16.msra.mxu0 %v3413_v55  ;;  %v4502_v43 = vld [vmem:[#allocation2 + $0x164] sm:$0xf]  ;;  %v3349_v44 = vor.u32 %v4470_v41, %v3346_v42  ;;  %v3474_v45 = vld [vmem:[#allocation2 + $0x170] sm:$0xf0] }
  0x3e   : > { %1439 = vmatpush.bf16.msra.mxu1 %v3541_v57  ;;  %v3477_v46 = vor.u32 %v4502_v43, %v3474_v45  ;;  %v4538_v47 = vld [vmem:[#allocation2 + $0x284] sm:$0xf]  ;;  %v3618_v48 = vld [vmem:[#allocation2 + $0x290] sm:$0xf0] }
  0x3f   : > { %v3621_v51 = vor.u32 %v4538_v47, %v3618_v48  ;;  %v4570_v52 = vld [vmem:[#allocation2 + $0x384] sm:$0xf]  ;;  %v3746_v53 = vld [vmem:[#allocation2 + $0x390] sm:$0xf0] }
  0x40   : > { %1408 = vmatpush.bf16.msrb.mxu3 %v3681_v63  ;;  %1458 = vmatpush.bf16.msra.mxu2 %v3669_v9  ;;  %v3749_v54 = vor.u32 %v4570_v52, %v3746_v53  ;;  %v4466_v55 = vld [vmem:[#allocation2 + $0x44] sm:$0xf]  ;;  %v3330_v56 = vld [vmem:[#allocation2 + $0x50] sm:$0xf0] }
  0x41   : > { %1421 = vmatpush.bf16.msra.mxu0 %v3397_v3  ;;  %v4498_v57 = vld [vmem:[#allocation2 + $0x144] sm:$0xf]  ;;  %v3333_v60 = vor.u32 %v4466_v55, %v3330_v56  ;;  %v3458_v61 = vld [vmem:[#allocation2 + $0x150] sm:$0xf0] }
  0x42   : > { %1440 = vmatpush.bf16.msra.mxu1 %v3525_v5  ;;  %v3461_v63 = vor.u32 %v4498_v57, %v3458_v61  ;;  %v4534_v0 = vld [vmem:[#allocation2 + $0x264] sm:$0xf]  ;;  %v3602_v1 = vld [vmem:[#allocation2 + $0x270] sm:$0xf0]  ;;  %v3416_v57 = vld [vmem:[#allocation2 + $0xe8] sm:$0xf] }
  0x43   : > { %v4566_v2 = vld [vmem:[#allocation2 + $0x364] sm:$0xf]  ;;  %v3605_v7 = vor.u32 %v4534_v0, %v3602_v1  ;;  %v3730_v8 = vld [vmem:[#allocation2 + $0x370] sm:$0xf0]  ;;  %v3544_v61 = vld [vmem:[#allocation2 + $0x1e8] sm:$0xf] }
  0x44   : > { %1477 = vmatpush.bf16.msra.mxu3 %v3797_v11  ;;  %1459 = vmatpush.bf16.msra.mxu2 %v3653_v22  ;;  %v3733_v11 = vor.u32 %v4566_v2, %v3730_v8  ;;  %v4462_v12 = vld [vmem:[#allocation2 + $0x24] sm:$0xf]  ;;  %v3314_v13 = vld [vmem:[#allocation2 + $0x30] sm:$0xf0]  ;;  %v4521_v0 = vld [vmem:[#allocation2 + $0x1f4] sm:$0xf0] }
  0x45   : > { %1422 = vmatpush.bf16.msra.mxu0 %v3381_v15  ;;  %v4494_v14 = vld [vmem:[#allocation2 + $0x124] sm:$0xf]  ;;  %v3317_v16 = vor.u32 %v4462_v12, %v3314_v13  ;;  %v3586_v22 = vld [vmem:[#allocation2 + $0x250] sm:$0xf0] }
  0x46   : > { %1441 = vmatpush.bf16.msra.mxu1 %v3509_v17  ;;  %v3442_v17 = vld [vmem:[#allocation2 + $0x130] sm:$0xf0]  ;;  %v4530_v18 = vld [vmem:[#allocation2 + $0x244] sm:$0xf] }
  0x47   : > { %v3445_v21 = vor.u32 %v4494_v14, %v3442_v17  ;;  %v3589_v26 = vor.u32 %v4530_v18, %v3586_v22  ;;  %v4562_v27 = vld [vmem:[#allocation2 + $0x344] sm:$0xf]  ;;  %v3298_v33 = vld [vmem:[#allocation2 + $0x10] sm:$0xf0]  ;;  %v3528_v17 = vld [vmem:[#allocation2 + $0x1c8] sm:$0xf] }
  0x48   : > { %1478 = vmatpush.bf16.msra.mxu3 %v3781_v24  ;;  %1460 = vmatpush.bf16.msra.mxu2 %v3637_v37  ;;  %v4458_v32 = vld [vmem:[#allocation2 + $0x4] sm:$0xf]  ;;  %v3570_v41 = vld [vmem:[#allocation2 + $0x230] sm:$0xf0] }
  0x49   : > { %1423 = vmatpush.bf16.msra.mxu0 %v3365_v28  ;;  %v3714_v28 = vld [vmem:[#allocation2 + $0x350] sm:$0xf0]  ;;  %v3301_v38 = vor.u32 %v4458_v32, %v3298_v33  ;;  %v4558_v47 = vld [vmem:[#allocation2 + $0x324] sm:$0xf]  ;;  %v4585_v32 = vld [vmem:[#allocation2 + $0x3f4] sm:$0xf0] }
  0x4a   : > { %1442 = vmatpush.bf16.msra.mxu1 %v3493_v30  ;;  %v3717_v31 = vor.u32 %v4562_v27, %v3714_v28  ;;  %v3698_v48 = vld [vmem:[#allocation2 + $0x330] sm:$0xf0]  ;;  %v4522_v1 = vld [vmem:[#allocation2 + $0x204] sm:$0xf]  ;;  %v3800_v27 = vld [vmem:[#allocation2 + $0x3e8] sm:$0xf] }
  0x4c   : > { %1479 = vmatpush.bf16.msra.mxu3 %v3765_v40  ;;  %1461 = vmatpush.bf16.msra.mxu2 %v3621_v51  ;;  %v4526_v40 = vld [vmem:[#allocation2 + $0x224] sm:$0xf] }
  0x4d   : > { %1424 = vmatpush.bf16.msra.mxu0 %v3349_v44 }
  0x4e   : > { %1443 = vmatpush.bf16.msra.mxu1 %v3477_v46  ;;  %v3573_v46 = vor.u32 %v4526_v40, %v3570_v41  ;;  %v3512_v40 = vld [vmem:[#allocation2 + $0x1a8] sm:$0xf] }
  0x50   : > { %1480 = vmatpush.bf16.msra.mxu3 %v3749_v54  ;;  %1462 = vmatpush.bf16.msra.mxu2 %v3605_v7  ;;  %v3701_v54 = vor.u32 %v4558_v47, %v3698_v48 }
  0x51   : > { %1425 = vmatpush.bf16.msra.mxu0 %v3333_v60  ;;  %v4489_v60 = vld [vmem:[#allocation2 + $0xf4] sm:$0xf0] }
  0x52   : > { %1444 = vmatpush.bf16.msra.mxu1 %v3461_v63  ;;  %v3417_v63 = vor.u32 %v4489_v60, %v3416_v57  ;;  %v3368_v60 = vld [vmem:[#allocation2 + $0x88] sm:$0xf] }
  0x54   : > { %1481 = vmatpush.bf16.msra.mxu3 %v3733_v11  ;;  %1463 = vmatpush.bf16.msra.mxu2 %v3589_v26  ;;  %v3682_v11 = vld [vmem:[#allocation2 + $0x310] sm:$0xf0]  ;;  %v4553_v26 = vld [vmem:[#allocation2 + $0x2f4] sm:$0xf0] }
  0x55   : > { %1426 = vmatpush.bf16.msra.mxu0 %v3317_v16  ;;  %v4485_v16 = vld [vmem:[#allocation2 + $0xd4] sm:$0xf0] }
  0x56   : > { %1445 = vmatpush.bf16.msra.mxu1 %v3445_v21 }
  0x58   : > { %1482 = vmatpush.bf16.msra.mxu3 %v3717_v31  ;;  %1464 = vmatpush.bf16.msra.mxu2 %v3573_v46 }
  0x59   : > { %1427 = vmatpush.bf16.msra.mxu0 %v3301_v38  ;;  %v3384_v38 = vld [vmem:[#allocation2 + $0xa8] sm:$0xf] }
  0x5c   : > { %1483 = vmatpush.bf16.msra.mxu3 %v3701_v54  ;;  %v4581_v54 = vld [vmem:[#allocation2 + $0x3d4] sm:$0xf0] }
  0x99   : > { %v459_v35 = vpop.f32.mrf.mxu0 }
  0x9a   : > { %v478_v39 = vpop.f32.mrf.mxu1  ;;  %v5020_v49 = vadd.f32 %v459_v35, %v5015_v34  ;;  %v4490_v35 = vld [vmem:[#allocation2 + $0x104] sm:$0xf] }
  0x9b   : > { %v5023_v50 = vadd.f32 %v478_v39, %v5017_v36  ;;  %v3426_v39 = vld [vmem:[#allocation2 + $0x110] sm:$0xf0] }
  0x9c   : > { %v526_v3 = vmul.f32 0.01, %v5020_v49  ;;  %v3429_v45 = vor.u32 %v4490_v35, %v3426_v39  ;;  %v4481_v39 = vld [vmem:[#allocation2 + $0xb4] sm:$0xf0] }
  0x9d   : > { %v527_v4 = vmul.f32 0.01, %v5023_v50 }
  0x9e   : > { %v542_v29 = vmax.f32 %v5020_v49, %v526_v3  ;;  %1446 = vmatpush.bf16.msra.mxu1 %v3429_v45  ;;  %v3656_v45 = vld [vmem:[#allocation2 + $0x2c8] sm:$0xf] }
  0x9f   : > { %v543_v23 = vmax.f32 %v5023_v50, %v527_v4  ;;  %v3545_v4 = vor.u32 %v4521_v0, %v3544_v61  ;;  %v4477_v61 = vld [vmem:[#allocation2 + $0x94] sm:$0xf0] }
  0xa0   : > { %v3369_v0 = vor.u32 %v4477_v61, %v3368_v60 }
  0xa1   : > { %v497_v62 = vpop.f32.mrf.mxu2  ;;  %v461_v6 = vpop.f32.mrf.mxu0 }
  0xa2   : > { %v516_v5 = vpop.f32.mrf.mxu3  ;;  %v462_v9 = vadd.f32 %v461_v6, %v5015_v34  ;;  %v480_v10 = vpop.f32.mrf.mxu1  ;;  %v5034_v19 = vadd.f32 %v497_v62, %v5025_v58 }
  0xa3   : > { %v481_v15 = vadd.f32 %v480_v10, %v5017_v36  ;;  %v5038_v24 = vadd.f32 %v516_v5, %v5027_v59  ;;  %v3554_v5 = vld [vmem:[#allocation2 + $0x210] sm:$0xf0]  ;;  %v4554_v10 = vld [vmem:[#allocation2 + $0x304] sm:$0xf] }
  0xa4   : > { %v530_v20 = vmul.f32 0.01, %v462_v9  ;;  %v528_v42 = vmul.f32 0.01, %v5034_v19  ;;  %v3685_v14 = vor.u32 %v4554_v10, %v3682_v11  ;;  %v4577_v10 = vld [vmem:[#allocation2 + $0x3b4] sm:$0xf0] }
  0xa5   : > { %v531_v25 = vmul.f32 0.01, %v481_v15  ;;  %v529_v49 = vmul.f32 0.01, %v5038_v24 }
  0xa6   : > { %v546_v30 = vmax.f32 %v462_v9, %v530_v20  ;;  %v544_v2 = vmax.f32 %v5034_v19, %v528_v42  ;;  %v3557_v9 = vor.u32 %v4522_v1, %v3554_v5  ;;  %v4517_v20 = vld [vmem:[#allocation2 + $0x1d4] sm:$0xf0]  ;;  %1484 = vmatpush.bf16.msra.mxu3 %v3685_v14  ;;  %v3385_v42 = vor.u32 %v4481_v39, %v3384_v38 }
  0xa7   : > { %v547_v37 = vmax.f32 %v481_v15, %v531_v25  ;;  %v545_v12 = vmax.f32 %v5038_v24, %v529_v49  ;;  %v3400_v15 = vld [vmem:[#allocation2 + $0xc8] sm:$0xf]  ;;  %v4549_v49 = vld [vmem:[#allocation2 + $0x2d4] sm:$0xf0] }
  0xa8   : > { %v5042_v43 = vpack.c.bf16 %v546_v30, %v542_v29  ;;  %1465 = vmatpush.bf16.msra.mxu2 %v3557_v9  ;;  %v3401_v19 = vor.u32 %v4485_v16, %v3400_v15  ;;  %v3672_v25 = vld [vmem:[#allocation2 + $0x2e8] sm:$0xf]  ;;  %v4509_v1 = vld [vmem:[#allocation2 + $0x194] sm:$0xf0] }
  0xa9   : > { %v499_v44 = vpop.f32.mrf.mxu2  ;;  %v5045_v50 = vpack.c.bf16 %v547_v37, %v543_v23  ;;  %v464_v53 = vpop.f32.mrf.mxu0  ;;  %v3529_v23 = vor.u32 %v4517_v20, %v3528_v17  ;;  %v3673_v31 = vor.u32 %v4553_v26, %v3672_v25  ;;  %v3801_v37 = vor.u32 %v4585_v32, %v3800_v27  ;;  %v3768_v9 = vld [vmem:[#allocation2 + $0x3a8] sm:$0xf]  ;;  %v4505_v25 = vld [vmem:[#allocation2 + $0x174] sm:$0xf0] }
  0xaa   : > { %v500_v51 = vadd.f32 %v499_v44, %v5025_v58  ;;  %v518_v52 = vpop.f32.mrf.mxu3  ;;  %v483_v56 = vpop.f32.mrf.mxu1  ;;  %1352 = vmatmul.bf16.vlgmr.msrb.gmra.mxu0 %v5042_v43  ;;  %v5053_v7 = vadd.f32 %v464_v53, %v5015_v34  ;;  %v4513_v44 = vld [vmem:[#allocation2 + $0x1b4] sm:$0xf0]  ;;  %v3657_v53 = vor.u32 %v4549_v49, %v3656_v45  ;;  %v3769_v15 = vor.u32 %v4577_v10, %v3768_v9  ;;  %v3352_v17 = vld [vmem:[#allocation2 + $0x68] sm:$0xf] }
  0xab   : > { %v519_v55 = vadd.f32 %v518_v52, %v5027_v59  ;;  %1371 = vmatmul.bf16.vlgmr.msrb.gmra.mxu1 %v5045_v50  ;;  %v5056_v8 = vadd.f32 %v483_v56, %v5017_v36  ;;  %1496 = vmatpush.bf16.msrb.mxu0 %v3417_v63  ;;  %v3513_v48 = vor.u32 %v4513_v44, %v3512_v40  ;;  %v3480_v20 = vld [vmem:[#allocation2 + $0x168] sm:$0xf]  ;;  %v4529_v9 = vld [vmem:[#allocation2 + $0x234] sm:$0xf0] }
  0xac   : > { %v532_v62 = vmul.f32 0.01, %v500_v51  ;;  %1515 = vmatpush.bf16.msrb.mxu1 %v3545_v4  ;;  %v534_v24 = vmul.f32 0.01, %v5053_v7  ;;  %v3624_v26 = vld [vmem:[#allocation2 + $0x288] sm:$0xf] }
  0xad   : > { %v533_v3 = vmul.f32 0.01, %v519_v55  ;;  %v535_v28 = vmul.f32 0.01, %v5056_v8  ;;  %v3336_v32 = vld [vmem:[#allocation2 + $0x48] sm:$0xf] }
  0xae   : > { %v548_v6 = vmax.f32 %v500_v51, %v532_v62  ;;  %v3496_v62 = vld [vmem:[#allocation2 + $0x188] sm:$0xf] }
  0xaf   : > { %v549_v13 = vmax.f32 %v519_v55, %v533_v3  ;;  %1497 = vmatpush.bf16.msrb.mxu0 %v3401_v19  ;;  %v550_v55 = vmax.f32 %v5053_v7, %v534_v24  ;;  %v4545_v3 = vld [vmem:[#allocation2 + $0x2b4] sm:$0xf0]  ;;  %v3464_v40 = vld [vmem:[#allocation2 + $0x148] sm:$0xf] }
  0xb0   : > { %v5059_v18 = vpack.c.bf16 %v548_v6, %v544_v2  ;;  %1516 = vmatpush.bf16.msrb.mxu1 %v3529_v23  ;;  %v3640_v2 = vld [vmem:[#allocation2 + $0x2a8] sm:$0xf]  ;;  %v4473_v19 = vld [vmem:[#allocation2 + $0x74] sm:$0xf0] }
  0xb1   : > { %v5061_v21 = vpack.c.bf16 %v549_v13, %v545_v12  ;;  %v502_v22 = vpop.f32.mrf.mxu2  ;;  %v466_v30 = vpop.f32.mrf.mxu0  ;;  %v3641_v7 = vor.u32 %v4545_v3, %v3640_v2  ;;  %v3353_v23 = vor.u32 %v4473_v19, %v3352_v17  ;;  %v4541_v24 = vld [vmem:[#allocation2 + $0x294] sm:$0xf0]  ;;  %v3432_v3 = vld [vmem:[#allocation2 + $0x108] sm:$0xf]  ;;  %v4519_v17 = vld [vmem:[#allocation2 + $0x1ec] sm:$0xf] }
  0xb2   : > { %v521_v29 = vpop.f32.mrf.mxu3  ;;  %1390 = vmatmul.bf16.vlgmr.msrb.gmra.mxu2 %v5059_v18  ;;  %v467_v33 = vadd.f32 %v466_v30, %v5015_v34  ;;  %v485_v35 = vpop.f32.mrf.mxu1  ;;  %v5070_v46 = vadd.f32 %v502_v22, %v5025_v58  ;;  %v551_v34 = vmax.f32 %v5056_v8, %v535_v28  ;;  %v3497_v8 = vor.u32 %v4509_v1, %v3496_v62  ;;  %v3752_v28 = vld [vmem:[#allocation2 + $0x388] sm:$0xf]  ;;  %v4461_v2 = vld [vmem:[#allocation2 + $0x14] sm:$0xf0] }
  0xb3   : > { %1409 = vmatmul.bf16.vlgmr.msrb.gmra.mxu3 %v5061_v21  ;;  %v486_v41 = vadd.f32 %v485_v35, %v5017_v36  ;;  %1534 = vmatpush.bf16.msrb.mxu2 %v3673_v31  ;;  %v5074_v51 = vadd.f32 %v521_v29, %v5027_v59  ;;  %v3784_v36 = vld [vmem:[#allocation2 + $0x3c8] sm:$0xf]  ;;  %v3625_v30 = vor.u32 %v4541_v24, %v3624_v26  ;;  %v4573_v31 = vld [vmem:[#allocation2 + $0x394] sm:$0xf0]  ;;  %v4483_v24 = vld [vmem:[#allocation2 + $0xcc] sm:$0xf] }
  0xb4   : > { %v538_v47 = vmul.f32 0.01, %v467_v33  ;;  %1553 = vmatpush.bf16.msrb.mxu3 %v3801_v37  ;;  %1498 = vmatpush.bf16.msrb.mxu0 %v3385_v42  ;;  %v3785_v57 = vor.u32 %v4581_v54, %v3784_v36  ;;  %v536_v4 = vmul.f32 0.01, %v5070_v46  ;;  %v3753_v38 = vor.u32 %v4573_v31, %v3752_v28  ;;  %v3448_v36 = vld [vmem:[#allocation2 + $0x128] sm:$0xf] }
  0xb5   : > { %v539_v52 = vmul.f32 0.01, %v486_v41  ;;  %1517 = vmatpush.bf16.msrb.mxu1 %v3513_v48  ;;  %v537_v11 = vmul.f32 0.01, %v5074_v51  ;;  %v3736_v48 = vld [vmem:[#allocation2 + $0x368] sm:$0xf] }
  0xb6   : > { %v554_v56 = vmax.f32 %v467_v33, %v538_v47  ;;  %v4469_v33 = vld [vmem:[#allocation2 + $0x54] sm:$0xf0]  ;;  %v3720_v62 = vld [vmem:[#allocation2 + $0x348] sm:$0xf] }
  0xb7   : > { %v555_v63 = vmax.f32 %v486_v41, %v539_v52  ;;  %1535 = vmatpush.bf16.msrb.mxu2 %v3657_v53  ;;  %v553_v35 = vmax.f32 %v5074_v51, %v537_v11  ;;  %v3337_v39 = vor.u32 %v4469_v33, %v3336_v32  ;;  %v4501_v41 = vld [vmem:[#allocation2 + $0x154] sm:$0xf0]  ;;  %v3320_v52 = vld [vmem:[#allocation2 + $0x28] sm:$0xf]  ;;  %v4551_v33 = vld [vmem:[#allocation2 + $0x2ec] sm:$0xf] }
  0xb8   : > { %v5078_v5 = vpack.c.bf16 %v554_v56, %v550_v55  ;;  %1554 = vmatpush.bf16.msrb.mxu3 %v3785_v57  ;;  %1499 = vmatpush.bf16.msrb.mxu0 %v3369_v0  ;;  %v3465_v44 = vor.u32 %v4501_v41, %v3464_v40  ;;  %v4537_v47 = vld [vmem:[#allocation2 + $0x274] sm:$0xf0]  ;;  %v3592_v56 = vld [vmem:[#allocation2 + $0x248] sm:$0xf]  ;;  %v4479_v41 = vld [vmem:[#allocation2 + $0xac] sm:$0xf] }
  0xb9   : > { %v504_v6 = vpop.f32.mrf.mxu2  ;;  %v5081_v12 = vpack.c.bf16 %v555_v63, %v551_v34  ;;  %1518 = vmatpush.bf16.msrb.mxu1 %v3497_v8  ;;  %v4569_v34 = vld [vmem:[#allocation2 + $0x374] sm:$0xf0]  ;;  %v3304_v0 = vld [vmem:[#allocation2 + $0x8] sm:$0xf] }
  0xba   : > { %v505_v13 = vadd.f32 %v504_v6, %v5025_v58  ;;  %v523_v14 = vpop.f32.mrf.mxu3  ;;  %1357 = vmatmul.bf16.gmra.mxu0 %v5078_v5  ;;  %v3481_v58 = vor.u32 %v4505_v25, %v3480_v20  ;;  %v3737_v51 = vor.u32 %v4569_v34, %v3736_v48  ;;  %v4465_v53 = vld [vmem:[#allocation2 + $0x34] sm:$0xf0]  ;;  %v3305_v6 = vor.u32 %v4461_v2, %v3304_v0  ;;  %v3704_v10 = vld [vmem:[#allocation2 + $0x328] sm:$0xf]  ;;  %v3546_v20 = vld [vmem:[#allocation2 + $0x1f8] sm:$0xf0] }
  0xbb   : > { %v524_v16 = vadd.f32 %v523_v14, %v5027_v59  ;;  %1376 = vmatmul.bf16.gmra.mxu1 %v5081_v12  ;;  %1536 = vmatpush.bf16.msrb.mxu2 %v3641_v7  ;;  %v552_v59 = vmax.f32 %v5070_v46, %v536_v4  ;;  %v3608_v46 = vld [vmem:[#allocation2 + $0x268] sm:$0xf]  ;;  %v3321_v54 = vor.u32 %v4465_v53, %v3320_v52  ;;  %v4497_v55 = vld [vmem:[#allocation2 + $0x134] sm:$0xf0]  ;;  %v3514_v48 = vld [vmem:[#allocation2 + $0x1b8] sm:$0xf0] }
  0xbc   : > { %v540_v22 = vmul.f32 0.01, %v505_v13  ;;  %1555 = vmatpush.bf16.msrb.mxu3 %v3769_v15  ;;  %1500 = vmatpush.bf16.msrb.mxu0 %v3353_v23  ;;  %v3609_v49 = vor.u32 %v4537_v47, %v3608_v46  ;;  %v4533_v57 = vld [vmem:[#allocation2 + $0x254] sm:$0xf0]  ;;  %v3449_v60 = vor.u32 %v4497_v55, %v3448_v36  ;;  %v3576_v7 = vld [vmem:[#allocation2 + $0x228] sm:$0xf]  ;;  %v3549_v25 = vor.u32 %v4519_v17, %v3546_v20 }
  0xbd   : > { %v541_v27 = vmul.f32 0.01, %v524_v16  ;;  %1519 = vmatpush.bf16.msrb.mxu1 %v3481_v58  ;;  %v3593_v61 = vor.u32 %v4533_v57, %v3592_v56  ;;  %v4565_v63 = vld [vmem:[#allocation2 + $0x354] sm:$0xf0]  ;;  %v3577_v11 = vor.u32 %v4529_v9, %v3576_v7  ;;  %v4487_v15 = vld [vmem:[#allocation2 + $0xec] sm:$0xf] }
  0xbe   : > { %v556_v29 = vmax.f32 %v505_v13, %v540_v22  ;;  %v3721_v1 = vor.u32 %v4565_v63, %v3720_v62  ;;  %v4493_v4 = vld [vmem:[#allocation2 + $0x114] sm:$0xf0]  ;;  %v3560_v22 = vld [vmem:[#allocation2 + $0x208] sm:$0xf]  ;;  %v4511_v46 = vld [vmem:[#allocation2 + $0x1ac] sm:$0xf] }
  0xbf   : > { %v557_v37 = vmax.f32 %v524_v16, %v541_v27  ;;  %1537 = vmatpush.bf16.msrb.mxu2 %v3625_v30  ;;  %v3433_v8 = vor.u32 %v4493_v4, %v3432_v3  ;;  %v4561_v13 = vld [vmem:[#allocation2 + $0x334] sm:$0xf0]  ;;  %v3418_v16 = vld [vmem:[#allocation2 + $0xf8] sm:$0xf0]  ;;  %v3688_v27 = vld [vmem:[#allocation2 + $0x308] sm:$0xf] }
  0xc0   : > { %v5089_v42 = vpack.c.bf16 %v556_v29, %v552_v59  ;;  %1556 = vmatpush.bf16.msrb.mxu3 %v3753_v38  ;;  %1501 = vmatpush.bf16.msrb.mxu0 %v3337_v39  ;;  %v3705_v14 = vor.u32 %v4561_v13, %v3704_v10  ;;  %v3421_v19 = vor.u32 %v4487_v15, %v3418_v16  ;;  %v4525_v23 = vld [vmem:[#allocation2 + $0x214] sm:$0xf0]  ;;  %v3402_v59 = vld [vmem:[#allocation2 + $0xd8] sm:$0xf0]  ;;  %v4515_v29 = vld [vmem:[#allocation2 + $0x1cc] sm:$0xf] }
  0xc1   : > { %v5091_v45 = vpack.c.bf16 %v557_v37, %v553_v35  ;;  %1520 = vmatpush.bf16.msrb.mxu1 %v3465_v44  ;;  %v3561_v26 = vor.u32 %v4525_v23, %v3560_v22  ;;  %v4557_v58 = vld [vmem:[#allocation2 + $0x314] sm:$0xf0]  ;;  %v3530_v30 = vld [vmem:[#allocation2 + $0x1d8] sm:$0xf0]  ;;  %v3405_v31 = vor.u32 %v4483_v24, %v3402_v59  ;;  %v4583_v37 = vld [vmem:[#allocation2 + $0x3ec] sm:$0xf] }
  0xc2   : > { %1395 = vmatmul.bf16.gmra.mxu2 %v5089_v42  ;;  %v3689_v28 = vor.u32 %v4557_v58, %v3688_v27  ;;  %v3533_v32 = vor.u32 %v4515_v29, %v3530_v30  ;;  %v3674_v35 = vld [vmem:[#allocation2 + $0x2f8] sm:$0xf0]  ;;  %v4579_v53 = vld [vmem:[#allocation2 + $0x3cc] sm:$0xf] }
  0xc3   : > { %1414 = vmatmul.bf16.gmra.mxu3 %v5091_v45  ;;  %1538 = vmatpush.bf16.msrb.mxu2 %v3609_v49  ;;  %v3677_v38 = vor.u32 %v4551_v33, %v3674_v35  ;;  %v3802_v39 = vld [vmem:[#allocation2 + $0x3f8] sm:$0xf0]  ;;  %v4547_v49 = vld [vmem:[#allocation2 + $0x2cc] sm:$0xf] }
  0xc4   : > { %1557 = vmatpush.bf16.msrb.mxu3 %v3737_v51  ;;  %1502 = vmatpush.bf16.msrb.mxu0 %v3321_v54  ;;  %v3805_v40 = vor.u32 %v4583_v37, %v3802_v39  ;;  %v3386_v44 = vld [vmem:[#allocation2 + $0xb8] sm:$0xf0]  ;;  %v3517_v51 = vor.u32 %v4511_v46, %v3514_v48  ;;  %v4475_v54 = vld [vmem:[#allocation2 + $0x8c] sm:$0xf] }
  0xc5   : > { %1521 = vmatpush.bf16.msrb.mxu1 %v3449_v60  ;;  %v3389_v47 = vor.u32 %v4479_v41, %v3386_v44  ;;  %v3658_v34 = vld [vmem:[#allocation2 + $0x2d8] sm:$0xf0]  ;;  %v4507_v57 = vld [vmem:[#allocation2 + $0x18c] sm:$0xf] }
  0xc6   : > { %v3661_v52 = vor.u32 %v4547_v49, %v3658_v34  ;;  %v3786_v36 = vld [vmem:[#allocation2 + $0x3d8] sm:$0xf0]  ;;  %v4543_v63 = vld [vmem:[#allocation2 + $0x2ac] sm:$0xf] }
  0xc7   : > { %1539 = vmatpush.bf16.msrb.mxu2 %v3593_v61  ;;  %v3789_v55 = vor.u32 %v4579_v53, %v3786_v36  ;;  %v3370_v56 = vld [vmem:[#allocation2 + $0x98] sm:$0xf0]  ;;  %v4503_v7 = vld [vmem:[#allocation2 + $0x16c] sm:$0xf] }
  0xc8   : > { %1558 = vmatpush.bf16.msrb.mxu3 %v3721_v1  ;;  %1503 = vmatpush.bf16.msrb.mxu0 %v3305_v6  ;;  %v3498_v60 = vld [vmem:[#allocation2 + $0x198] sm:$0xf0]  ;;  %v3373_v61 = vor.u32 %v4475_v54, %v3370_v56  ;;  %v4575_v1 = vld [vmem:[#allocation2 + $0x3ac] sm:$0xf] }
  0xc9   : > { %1522 = vmatpush.bf16.msrb.mxu1 %v3433_v8  ;;  %v3501_v62 = vor.u32 %v4507_v57, %v3498_v60  ;;  %v3642_v0 = vld [vmem:[#allocation2 + $0x2b8] sm:$0xf0]  ;;  %v4471_v6 = vld [vmem:[#allocation2 + $0x6c] sm:$0xf] }
  0xca   : > { %1428 = vmatmul.bf16.vlgmr.msra.gmra.mxu0 %v5042_v43  ;;  %v3645_v2 = vor.u32 %v4543_v63, %v3642_v0  ;;  %v3770_v3 = vld [vmem:[#allocation2 + $0x3b8] sm:$0xf0]  ;;  %v4571_v16 = vld [vmem:[#allocation2 + $0x38c] sm:$0xf] }
  0xcb   : > { %1447 = vmatmul.bf16.vlgmr.msra.gmra.mxu1 %v5045_v50  ;;  %1540 = vmatpush.bf16.msrb.mxu2 %v3577_v11  ;;  %v3773_v4 = vor.u32 %v4575_v1, %v3770_v3  ;;  %v3354_v8 = vld [vmem:[#allocation2 + $0x78] sm:$0xf0]  ;;  %v4539_v11 = vld [vmem:[#allocation2 + $0x28c] sm:$0xf]  ;;  %v3920_v3 = vld [vmem:[#allocation4 + $0xe0] sm:$0xf] }
  0xcc   : > { %1559 = vmatpush.bf16.msrb.mxu3 %v3705_v14  ;;  %1572 = vmatpush.bf16.msra.mxu0 %v3421_v19  ;;  %v3357_v9 = vor.u32 %v4471_v6, %v3354_v8  ;;  %v3482_v10 = vld [vmem:[#allocation2 + $0x178] sm:$0xf0]  ;;  %v4467_v19 = vld [vmem:[#allocation2 + $0x4c] sm:$0xf]  ;;  %v3904_v8 = vld [vmem:[#allocation4 + $0xc0] sm:$0xf] }
  0xcd   : > { %1591 = vmatpush.bf16.msra.mxu1 %v3549_v25  ;;  %v3626_v13 = vld [vmem:[#allocation2 + $0x298] sm:$0xf0]  ;;  %v3485_v14 = vor.u32 %v4503_v7, %v3482_v10  ;;  %v4499_v23 = vld [vmem:[#allocation2 + $0x14c] sm:$0xf]  ;;  %v4612_v7 = vld [vmem:[#allocation4 + $0xcc] sm:$0xf0] }
  0xce   : > { %v3629_v15 = vor.u32 %v4539_v11, %v3626_v13  ;;  %v3754_v17 = vld [vmem:[#allocation2 + $0x398] sm:$0xf0]  ;;  %v4535_v58 = vld [vmem:[#allocation2 + $0x26c] sm:$0xf]  ;;  %v3888_v10 = vld [vmem:[#allocation4 + $0xa0] sm:$0xf] }
  0xcf   : > { %1541 = vmatpush.bf16.msrb.mxu2 %v3561_v26  ;;  %v3757_v20 = vor.u32 %v4571_v16, %v3754_v17  ;;  %v3338_v22 = vld [vmem:[#allocation2 + $0x58] sm:$0xf0]  ;;  %v4495_v33 = vld [vmem:[#allocation2 + $0x12c] sm:$0xf]  ;;  %v4608_v11 = vld [vmem:[#allocation4 + $0xac] sm:$0xf0] }
  0xd0   : > { %1560 = vmatpush.bf16.msrb.mxu3 %v3689_v28  ;;  %1573 = vmatpush.bf16.msra.mxu0 %v3405_v31  ;;  %v3466_v25 = vld [vmem:[#allocation2 + $0x158] sm:$0xf0]  ;;  %v3341_v26 = vor.u32 %v4467_v19, %v3338_v22  ;;  %v4567_v28 = vld [vmem:[#allocation2 + $0x36c] sm:$0xf]  ;;  %v3889_v13 = vor.u32 %v4608_v11, %v3888_v10  ;;  %v3856_v17 = vld [vmem:[#allocation4 + $0x60] sm:$0xf] }
  0xd1   : > { %1592 = vmatpush.bf16.msra.mxu1 %v3533_v32  ;;  %v3469_v27 = vor.u32 %v4499_v23, %v3466_v25  ;;  %v3610_v24 = vld [vmem:[#allocation2 + $0x278] sm:$0xf0]  ;;  %v4463_v31 = vld [vmem:[#allocation2 + $0x2c] sm:$0xf]  ;;  %v4592_v23 = vld [vmem:[#allocation4 + $0x2c] sm:$0xf0] }
  0xd2   : > { %1466 = vmatmul.bf16.vlgmr.msra.gmra.mxu2 %v5059_v18  ;;  %v3613_v59 = vor.u32 %v4535_v58, %v3610_v24  ;;  %v3738_v29 = vld [vmem:[#allocation2 + $0x378] sm:$0xf0]  ;;  %v4563_v44 = vld [vmem:[#allocation2 + $0x34c] sm:$0xf]  ;;  %v4048_v58 = vld [vmem:[#allocation4 + $0x1e0] sm:$0xf] }
  0xd3   : > { %1485 = vmatmul.bf16.vlgmr.msra.gmra.mxu3 %v5061_v21  ;;  %1610 = vmatpush.bf16.msra.mxu2 %v3677_v38  ;;  %v3741_v30 = vor.u32 %v4567_v28, %v3738_v29  ;;  %v3322_v32 = vld [vmem:[#allocation2 + $0x38] sm:$0xf0]  ;;  %v4531_v38 = vld [vmem:[#allocation2 + $0x24c] sm:$0xf]  ;;  %v4614_v24 = vld [vmem:[#allocation4 + $0xe4] sm:$0xf] }
  0xd4   : > { %1629 = vmatpush.bf16.msra.mxu3 %v3805_v40  ;;  %1574 = vmatpush.bf16.msra.mxu0 %v3389_v47  ;;  %v3325_v35 = vor.u32 %v4463_v31, %v3322_v32  ;;  %v3450_v37 = vld [vmem:[#allocation2 + $0x138] sm:$0xf0]  ;;  %v4459_v47 = vld [vmem:[#allocation2 + $0xc] sm:$0xf]  ;;  %v5122_v31 = vld [vmem:[%s5332_s4] sm:$0xf] }
  0xd5   : > { %1593 = vmatpush.bf16.msra.mxu1 %v3517_v51  ;;  %v3594_v39 = vld [vmem:[#allocation2 + $0x258] sm:$0xf0]  ;;  %v3453_v40 = vor.u32 %v4495_v33, %v3450_v37  ;;  %v4491_v34 = vld [vmem:[#allocation2 + $0x10c] sm:$0xf]  ;;  %v4610_v32 = vld [vmem:[#allocation4 + $0xc4] sm:$0xf] }
  0xd6   : > { %v3597_v41 = vor.u32 %v4531_v38, %v3594_v39  ;;  %v3722_v46 = vld [vmem:[#allocation2 + $0x358] sm:$0xf0]  ;;  %v4527_v36 = vld [vmem:[#allocation2 + $0x22c] sm:$0xf]  ;;  %v5125_v38 = vperm.slane %v5122_v31, 0 }
  0xd7   : > { %1611 = vmatpush.bf16.msra.mxu2 %v3661_v52  ;;  %v3725_v48 = vor.u32 %v4563_v44, %v3722_v46  ;;  %v3306_v49 = vld [vmem:[#allocation2 + $0x18] sm:$0xf0]  ;;  %v4555_v63 = vld [vmem:[#allocation2 + $0x30c] sm:$0xf]  ;;  %v4016_v39 = vld [vmem:[#allocation4 + $0x1a0] sm:$0xf] }
  0xd8   : > { %1630 = vmatpush.bf16.msra.mxu3 %v3789_v55  ;;  %1575 = vmatpush.bf16.msra.mxu0 %v3373_v61  ;;  %v3434_v51 = vld [vmem:[#allocation2 + $0x118] sm:$0xf0]  ;;  %v3309_v52 = vor.u32 %v4459_v47, %v3306_v49  ;;  %v4559_v55 = vld [vmem:[#allocation2 + $0x32c] sm:$0xf]  ;;  %v3890_v47 = vld [vmem:[#allocation4 + $0xb0] sm:$0xf0] }
  0xd9   : > { %1594 = vmatpush.bf16.msra.mxu1 %v3501_v62  ;;  %v3437_v53 = vor.u32 %v4491_v34, %v3434_v51  ;;  %v3578_v54 = vld [vmem:[#allocation2 + $0x238] sm:$0xf0]  ;;  %v4523_v61 = vld [vmem:[#allocation2 + $0x20c] sm:$0xf]  ;;  %v4000_v51 = vld [vmem:[#allocation4 + $0x180] sm:$0xf] }
  0xda   : > { %1433 = vmatmul.bf16.gmra.mxu0 %v5078_v5  ;;  %v3581_v56 = vor.u32 %v4527_v36, %v3578_v54  ;;  %v3706_v57 = vld [vmem:[#allocation2 + $0x338] sm:$0xf0]  ;;  %v3874_v54 = vld [vmem:[#allocation4 + $0x90] sm:$0xf0]  ;;  %v4594_v10 = vld [vmem:[#allocation4 + $0x44] sm:$0xf] }
  0xdb   : > { %1452 = vmatmul.bf16.gmra.mxu1 %v5081_v12  ;;  %1612 = vmatpush.bf16.msra.mxu2 %v3645_v2  ;;  %v3709_v60 = vor.u32 %v4559_v55, %v3706_v57  ;;  %v3562_v62 = vld [vmem:[#allocation2 + $0x218] sm:$0xf0] }
  0xdc   : > { %1631 = vmatpush.bf16.msra.mxu3 %v3773_v4  ;;  %1576 = vmatpush.bf16.msra.mxu0 %v3357_v9  ;;  %v3565_v0 = vor.u32 %v4523_v61, %v3562_v62  ;;  %v3690_v1 = vld [vmem:[#allocation2 + $0x318] sm:$0xf0]  ;;  %v4616_v4 = vld [vmem:[#allocation4 + $0xec] sm:$0xf0]  ;;  %v3905_v9 = vor.u32 %v4612_v7, %v3904_v8  ;;  %v3984_v61 = vld [vmem:[#allocation4 + $0x160] sm:$0xf] }
  0xdd   : > { %1595 = vmatpush.bf16.msra.mxu1 %v3485_v14  ;;  %v3693_v2 = vor.u32 %v4555_v63, %v3690_v1  ;;  %v3921_v6 = vor.u32 %v4616_v4, %v3920_v3  ;;  %v3872_v14 = vld [vmem:[#allocation4 + $0x80] sm:$0xf]  ;;  %v4632_v62 = vld [vmem:[#allocation4 + $0x16c] sm:$0xf0]  ;;  %v4598_v63 = vld [vmem:[#allocation4 + $0x64] sm:$0xf] }
  0xde   : > { %v3985_v3 = vor.u32 %v4632_v62, %v3984_v61  ;;  %v3858_v4 = vld [vmem:[#allocation4 + $0x70] sm:$0xf0]  ;;  %v3968_v7 = vld [vmem:[#allocation4 + $0x140] sm:$0xf] }
  0xdf   : > { %1613 = vmatpush.bf16.msra.mxu2 %v3629_v15  ;;  %v4604_v15 = vld [vmem:[#allocation4 + $0x8c] sm:$0xf0]  ;;  %v3861_v8 = vor.u32 %v4598_v63, %v3858_v4  ;;  %v4034_v63 = vld [vmem:[#allocation4 + $0x1d0] sm:$0xf0] }
  0xe0   : > { %1632 = vmatpush.bf16.msra.mxu3 %v3757_v20  ;;  %1577 = vmatpush.bf16.msra.mxu0 %v3341_v26  ;;  %v3873_v16 = vor.u32 %v4604_v15, %v3872_v14  ;;  %v4596_v20 = vld [vmem:[#allocation4 + $0x4c] sm:$0xf0]  ;;  %v3842_v15 = vld [vmem:[#allocation4 + $0x50] sm:$0xf0] }
  0xe1   : > { %1596 = vmatpush.bf16.msra.mxu1 %v3469_v27  ;;  %v4588_v26 = vld [vmem:[#allocation4 + $0xc] sm:$0xf0] }
  0xe2   : > { %1471 = vmatmul.bf16.gmra.mxu2 %v5089_v42 }
  0xe3   : > { %1490 = vmatmul.bf16.gmra.mxu3 %v5091_v45  ;;  %1614 = vmatpush.bf16.msra.mxu2 %v3613_v59 }
  0xe4   : > { %1633 = vmatpush.bf16.msra.mxu3 %v3741_v30  ;;  %1578 = vmatpush.bf16.msra.mxu0 %v3325_v35  ;;  %v3906_v35 = vld [vmem:[#allocation4 + $0xd0] sm:$0xf0] }
  0xe5   : > { %1597 = vmatpush.bf16.msra.mxu1 %v3453_v40  ;;  %v3909_v37 = vor.u32 %v4610_v32, %v3906_v35  ;;  %v4640_v40 = vld [vmem:[#allocation4 + $0x1ac] sm:$0xf0]  ;;  %v3810_v32 = vld [vmem:[#allocation4 + $0x10] sm:$0xf0] }
  0xe6   : > { %v4017_v46 = vor.u32 %v4640_v40, %v4016_v39 }
  0xe7   : > { %1615 = vmatpush.bf16.msra.mxu2 %v3597_v41  ;;  %v4606_v41 = vld [vmem:[#allocation4 + $0xa4] sm:$0xf] }
  0xe8   : > { %1634 = vmatpush.bf16.msra.mxu3 %v3725_v48  ;;  %1579 = vmatpush.bf16.msra.mxu0 %v3309_v52  ;;  %v3893_v49 = vor.u32 %v4606_v41, %v3890_v47  ;;  %v4636_v52 = vld [vmem:[#allocation4 + $0x18c] sm:$0xf0]  ;;  %v4176_v41 = vld [vmem:[#allocation4 + $0x2e0] sm:$0xf] }
  0xe9   : > { %1598 = vmatpush.bf16.msra.mxu1 %v3437_v53  ;;  %v4602_v53 = vld [vmem:[#allocation4 + $0x84] sm:$0xf]  ;;  %v4001_v36 = vor.u32 %v4636_v52, %v4000_v51  ;;  %v3928_v51 = vld [vmem:[#allocation4 + $0xe8] sm:$0xf]  ;;  %v4617_v52 = vld [vmem:[#allocation4 + $0xf4] sm:$0xf0] }
  0xea   : > { %1504 = vmatmul.bf16.vlgmr.msrb.gmra.mxu0 %v5042_v43 }
  0xeb   : > { %1523 = vmatmul.bf16.vlgmr.msrb.gmra.mxu1 %v5045_v50  ;;  %1616 = vmatpush.bf16.msra.mxu2 %v3581_v56  ;;  %v3877_v56 = vor.u32 %v4602_v53, %v3874_v54  ;;  %v3929_v54 = vor.u32 %v4617_v52, %v3928_v51 }
  0xec   : > { %1635 = vmatpush.bf16.msra.mxu3 %v3709_v60  ;;  %2466 = vmatpush.bf16.msrb.mxu0 %v3921_v6 }
  0xef   : > { %1617 = vmatpush.bf16.msra.mxu2 %v3565_v0 }
  0xf0   : > { %1636 = vmatpush.bf16.msra.mxu3 %v3693_v2  ;;  %2467 = vmatpush.bf16.msrb.mxu0 %v3905_v9  ;;  %v4628_v9 = vld [vmem:[#allocation4 + $0x14c] sm:$0xf0] }
  0xf1   : > { %v3969_v14 = vor.u32 %v4628_v9, %v3968_v7  ;;  %v4144_v9 = vld [vmem:[#allocation4 + $0x2a0] sm:$0xf] }
  0xf2   : > { %1542 = vmatmul.bf16.vlgmr.msrb.gmra.mxu2 %v5059_v18 }
  0xf3   : > { %1561 = vmatmul.bf16.vlgmr.msrb.gmra.mxu3 %v5061_v21 }
  0xf4   : > { %2468 = vmatpush.bf16.msrb.mxu0 %v3889_v13 }
  0xf8   : > { %2469 = vmatpush.bf16.msrb.mxu0 %v3873_v16 }
  0xfa   : > { %1509 = vmatmul.bf16.gmra.mxu0 %v5078_v5 }
  0xfb   : > { %1528 = vmatmul.bf16.gmra.mxu1 %v5081_v12 }
 0x102   : > { %1547 = vmatmul.bf16.gmra.mxu2 %v5089_v42 }
 0x103   : > { %1566 = vmatmul.bf16.gmra.mxu3 %v5091_v45 }
 0x10a   : > { %1580 = vmatmul.bf16.vlgmr.msra.gmra.mxu0 %v5042_v43  ;;  %v4600_v43 = vld [vmem:[#allocation4 + $0x6c] sm:$0xf0] }
 0x10b   : > { %1599 = vmatmul.bf16.vlgmr.msra.gmra.mxu1 %v5045_v50  ;;  %v3857_v19 = vor.u32 %v4600_v43, %v3856_v17  ;;  %v3840_v50 = vld [vmem:[#allocation4 + $0x40] sm:$0xf]  ;;  %v3845_v17 = vor.u32 %v4594_v10, %v3842_v15  ;;  %v4672_v10 = vld [vmem:[#allocation4 + $0x2ac] sm:$0xf0] }
 0x10c   : > { %v3841_v22 = vor.u32 %v4596_v20, %v3840_v50  ;;  %v3952_v50 = vld [vmem:[#allocation4 + $0x120] sm:$0xf]  ;;  %v4624_v20 = vld [vmem:[#allocation4 + $0x12c] sm:$0xf0] }
 0x10d   : > { %2470 = vmatpush.bf16.msrb.mxu0 %v3857_v19 }
 0x111   : > { %2471 = vmatpush.bf16.msrb.mxu0 %v3841_v22  ;;  %v4590_v22 = vld [vmem:[#allocation4 + $0x24] sm:$0xf] }
 0x112   : > { %1618 = vmatmul.bf16.vlgmr.msra.gmra.mxu2 %v5059_v18  ;;  %v3824_v18 = vld [vmem:[#allocation4 + $0x20] sm:$0xf] }
 0x113   : > { %1637 = vmatmul.bf16.vlgmr.msra.gmra.mxu3 %v5061_v21  ;;  %v3825_v25 = vor.u32 %v4592_v23, %v3824_v18  ;;  %v3808_v21 = vld [vmem:[#allocation4] sm:$0xf] }
 0x114   : > { %v3809_v27 = vor.u32 %v4588_v26, %v3808_v21  ;;  %v3953_v26 = vor.u32 %v4624_v20, %v3952_v50 }
 0x115   : > { %2472 = vmatpush.bf16.msrb.mxu0 %v3825_v25 }
 0x119   : > { %2473 = vmatpush.bf16.msrb.mxu0 %v3809_v27  ;;  %v3826_v27 = vld [vmem:[#allocation4 + $0x30] sm:$0xf0] }
 0x11a   : > { %1585 = vmatmul.bf16.gmra.mxu0 %v5078_v5  ;;  %v4648_v5 = vld [vmem:[#allocation4 + $0x1ec] sm:$0xf0] }
 0x11b   : > { %1604 = vmatmul.bf16.gmra.mxu1 %v5081_v12  ;;  %v4049_v59 = vor.u32 %v4648_v5, %v4048_v58  ;;  %v3922_v12 = vld [vmem:[#allocation4 + $0xf0] sm:$0xf0]  ;;  %v3829_v5 = vor.u32 %v4590_v22, %v3826_v27 }
 0x11c   : > { %v3925_v30 = vor.u32 %v4614_v24, %v3922_v12  ;;  %v4586_v12 = vld [vmem:[#allocation4 + $0x4] sm:$0xf] }
 0x11d   : > { %2485 = vmatpush.bf16.msrb.mxu1 %v4049_v59  ;;  %v4620_v59 = vld [vmem:[#allocation4 + $0x10c] sm:$0xf0]  ;;  %v3813_v35 = vor.u32 %v4586_v12, %v3810_v32 }
 0x11e   : > { %2542 = vmatpush.bf16.msra.mxu0 %v3925_v30 }
 0x122   : > { %1623 = vmatmul.bf16.gmra.mxu2 %v5089_v42  ;;  %v4032_v42 = vld [vmem:[#allocation4 + $0x1c0] sm:$0xf]  ;;  %2543 = vmatpush.bf16.msra.mxu0 %v3909_v37 }
 0x123   : > { %1642 = vmatmul.bf16.gmra.mxu3 %v5091_v45  ;;  %v4644_v45 = vld [vmem:[#allocation4 + $0x1cc] sm:$0xf0] }
 0x124   : > { %v4033_v33 = vor.u32 %v4644_v45, %v4032_v42 }
 0x126   : > { %2486 = vmatpush.bf16.msrb.mxu1 %v4033_v33  ;;  %2544 = vmatpush.bf16.msra.mxu0 %v3893_v49 }
 0x127   : > { %v1353_v28 = vpop.f32.mrf.mxu0 }
 0x128   : > { %v1372_v29 = vpop.f32.mrf.mxu1  ;;  %v1354_v34 = vadd.f32 %v1353_v28, %v5125_v38  ;;  %v3936_v28 = vld [vmem:[#allocation4 + $0x100] sm:$0xf] }
 0x129   : > { %v3937_v45 = vor.u32 %v4620_v59, %v3936_v28  ;;  %v3880_v28 = vld [vmem:[#allocation4 + $0x88] sm:$0xf]  ;;  %v4605_v59 = vld [vmem:[#allocation4 + $0x94] sm:$0xf0] }
 0x12a   : > { %2487 = vmatpush.bf16.msrb.mxu1 %v4017_v46  ;;  %v1373_v57 = vadd.f32 %v1372_v29, %v1354_v34  ;;  %2545 = vmatpush.bf16.msra.mxu0 %v3877_v56  ;;  %v4646_v46 = vld [vmem:[#allocation4 + $0x1e4] sm:$0xf]  ;;  %v4050_v34 = vld [vmem:[#allocation4 + $0x1f0] sm:$0xf0]  ;;  %v5135_v56 = vperm.slane %v5122_v31, 1 }
 0x12e   : > { %2488 = vmatpush.bf16.msrb.mxu1 %v4001_v36  ;;  %2546 = vmatpush.bf16.msra.mxu0 %v3861_v8  ;;  %v4053_v36 = vor.u32 %v4646_v46, %v4050_v34  ;;  %v3986_v46 = vld [vmem:[#allocation4 + $0x170] sm:$0xf0] }
 0x12f   : > { %v1355_v44 = vpop.f32.mrf.mxu0 }
 0x130   : > { %v1374_v48 = vpop.f32.mrf.mxu1  ;;  %v1356_v0 = vadd.f32 %v1355_v44, %v5125_v38  ;;  %v4680_v44 = vld [vmem:[#allocation4 + $0x2ec] sm:$0xf0] }
 0x131   : > { %v4177_v49 = vor.u32 %v4680_v44, %v4176_v41 }
 0x132   : > { %2489 = vmatpush.bf16.msrb.mxu1 %v3985_v3  ;;  %v1375_v11 = vadd.f32 %v1374_v48, %v1356_v0  ;;  %2547 = vmatpush.bf16.msra.mxu0 %v3845_v17  ;;  %v3912_v0 = vld [vmem:[#allocation4 + $0xc8] sm:$0xf]  ;;  %v4018_v17 = vld [vmem:[#allocation4 + $0x1b0] sm:$0xf0] }
 0x133   : > { %2504 = vmatpush.bf16.msrb.mxu2 %v4177_v49 }
 0x135   : > { %v1391_v55 = vpop.f32.mrf.mxu2 }
 0x136   : > { %v1410_v60 = vpop.f32.mrf.mxu3  ;;  %v1392_v1 = vadd.f32 %v1391_v55, %v1373_v57  ;;  %2490 = vmatpush.bf16.msrb.mxu1 %v3969_v14  ;;  %2548 = vmatpush.bf16.msra.mxu0 %v3829_v5  ;;  %v4160_v57 = vld [vmem:[#allocation4 + $0x2c0] sm:$0xf] }
 0x137   : > { %v1358_v2 = vpop.f32.mrf.mxu0 }
 0x138   : > { %v1377_v6 = vpop.f32.mrf.mxu1  ;;  %v1411_v13 = vadd.f32 %v1410_v60, %v1392_v1  ;;  %v1359_v23 = vadd.f32 %v1358_v2, %v5125_v38  ;;  %v4676_v60 = vld [vmem:[#allocation4 + $0x2cc] sm:$0xf0]  ;;  %v4613_v1 = vld [vmem:[#allocation4 + $0xd4] sm:$0xf0] }
 0x139   : > { %v4161_v62 = vor.u32 %v4676_v60, %v4160_v57  ;;  %v3913_v4 = vor.u32 %v4613_v1, %v3912_v0  ;;  %v3970_v60 = vld [vmem:[#allocation4 + $0x150] sm:$0xf0] }
 0x13a   : > { %v1648_v18 = vmul.f32 0.01, %v1411_v13  ;;  %2491 = vmatpush.bf16.msrb.mxu1 %v3953_v26  ;;  %v1378_v30 = vadd.f32 %v1377_v6, %v1359_v23  ;;  %2549 = vmatpush.bf16.msra.mxu0 %v3813_v35  ;;  %v4128_v23 = vld [vmem:[#allocation4 + $0x280] sm:$0xf]  ;;  %v4664_v35 = vld [vmem:[#allocation4 + $0x26c] sm:$0xf0] }
 0x13b   : > { %2505 = vmatpush.bf16.msrb.mxu2 %v4161_v62 }
 0x13c   : > { %v1664_v29 = vmax.f32 %v1411_v13, %v1648_v18 }
 0x13d   : > { %v1393_v16 = vpop.f32.mrf.mxu2 }
 0x13e   : > { %v1394_v43 = vadd.f32 %v1393_v16, %v1375_v11  ;;  %v1412_v19 = vpop.f32.mrf.mxu3  ;;  %2492 = vmatpush.bf16.msrb.mxu1 %v3937_v45  ;;  %v4638_v11 = vld [vmem:[#allocation4 + $0x1a4] sm:$0xf]  ;;  %v4145_v16 = vor.u32 %v4672_v10, %v4144_v9 }
 0x13f   : > { %v1360_v21 = vpop.f32.mrf.mxu0  ;;  %v4021_v20 = vor.u32 %v4638_v11, %v4018_v17 }
 0x140   : > { %v1413_v25 = vadd.f32 %v1412_v19, %v1394_v43  ;;  %v1379_v58 = vpop.f32.mrf.mxu1  ;;  %v1361_v47 = vadd.f32 %v1360_v21, %v5125_v38  ;;  %v4642_v38 = vld [vmem:[#allocation4 + $0x1c4] sm:$0xf]  ;;  %v3896_v43 = vld [vmem:[#allocation4 + $0xa8] sm:$0xf]  ;;  %v4609_v19 = vld [vmem:[#allocation4 + $0xb4] sm:$0xf0]  ;;  %2506 = vmatpush.bf16.msrb.mxu2 %v4145_v16 }
 0x141   : > { %v4037_v3 = vor.u32 %v4642_v38, %v4034_v63  ;;  %v3897_v22 = vor.u32 %v4609_v19, %v3896_v43  ;;  %v4634_v21 = vld [vmem:[#allocation4 + $0x184] sm:$0xf]  ;;  %v3848_v38 = vld [vmem:[#allocation4 + $0x48] sm:$0xf] }
 0x142   : > { %v1652_v24 = vmul.f32 0.01, %v1413_v25  ;;  %2561 = vmatpush.bf16.msra.mxu1 %v4053_v36  ;;  %v1380_v61 = vadd.f32 %v1379_v58, %v1361_v47  ;;  %v3864_v47 = vld [vmem:[#allocation4 + $0x68] sm:$0xf]  ;;  %v4660_v36 = vld [vmem:[#allocation4 + $0x24c] sm:$0xf0] }
 0x144   : > { %v1668_v42 = vmax.f32 %v1413_v25, %v1652_v24  ;;  %v4668_v25 = vld [vmem:[#allocation4 + $0x28c] sm:$0xf0]  ;;  %v4002_v24 = vld [vmem:[#allocation4 + $0x190] sm:$0xf0] }
 0x145   : > { %v1396_v33 = vpop.f32.mrf.mxu2  ;;  %v4129_v5 = vor.u32 %v4668_v25, %v4128_v23 }
 0x146   : > { %v5130_v37 = vpack.c.bf16 %v1668_v42, %v1664_v29  ;;  %v1397_v39 = vadd.f32 %v1396_v33, %v1378_v30  ;;  %v1415_v40 = vpop.f32.mrf.mxu3  ;;  %2562 = vmatpush.bf16.msra.mxu1 %v4037_v3  ;;  %v4005_v29 = vor.u32 %v4634_v21, %v4002_v24  ;;  %v3881_v30 = vor.u32 %v4605_v59, %v3880_v28  ;;  %v4112_v33 = vld [vmem:[#allocation4 + $0x260] sm:$0xf] }
 0x147   : > { %v1429_v48 = vpop.f32.mrf.mxu0  ;;  %2507 = vmatpush.bf16.msrb.mxu2 %v4129_v5  ;;  %v4113_v44 = vor.u32 %v4664_v35, %v4112_v33 }
 0x148   : > { %2474 = vmatmul.bf16.vlgmr.msrb.gmra.mxu0 %v5130_v37  ;;  %v1448_v53 = vpop.f32.mrf.mxu1  ;;  %v1416_v55 = vadd.f32 %v1415_v40, %v1397_v39  ;;  %v1430_v13 = vadd.f32 %v1429_v48, %v5135_v56  ;;  %v4630_v39 = vld [vmem:[#allocation4 + $0x164] sm:$0xf]  ;;  %v4601_v48 = vld [vmem:[#allocation4 + $0x74] sm:$0xf0] }
 0x149   : > { %2618 = vmatpush.bf16.msrb.mxu0 %v3929_v54  ;;  %v3989_v34 = vor.u32 %v4630_v39, %v3986_v46  ;;  %v3865_v51 = vor.u32 %v4601_v48, %v3864_v47  ;;  %v4626_v54 = vld [vmem:[#allocation4 + $0x144] sm:$0xf] }
 0x14a   : > { %v1656_v6 = vmul.f32 0.01, %v1416_v55  ;;  %2563 = vmatpush.bf16.msra.mxu1 %v4021_v20  ;;  %v1449_v27 = vadd.f32 %v1448_v53, %v1430_v13  ;;  %v4096_v53 = vld [vmem:[#allocation4 + $0x240] sm:$0xf]  ;;  %v3973_v63 = vor.u32 %v4626_v54, %v3970_v60  ;;  %v3954_v13 = vld [vmem:[#allocation4 + $0x130] sm:$0xf0] }
 0x14b   : > { %2508 = vmatpush.bf16.msrb.mxu2 %v4113_v44  ;;  %v4097_v57 = vor.u32 %v4660_v36, %v4096_v53  ;;  %v4652_v20 = vld [vmem:[#allocation4 + $0x20c] sm:$0xf0]  ;;  %v4649_v44 = vld [vmem:[#allocation4 + $0x1f4] sm:$0xf0]  ;;  %v4288_v53 = vld [vmem:[#allocation4 + $0x3c0] sm:$0xf] }
 0x14c   : > { %v1672_v26 = vmax.f32 %v1416_v55, %v1656_v6  ;;  %v4656_v6 = vld [vmem:[#allocation4 + $0x22c] sm:$0xf0]  ;;  %v4674_v54 = vld [vmem:[#allocation4 + $0x2c4] sm:$0xf]  ;;  %v4162_v60 = vld [vmem:[#allocation4 + $0x2d0] sm:$0xf0] }
 0x14d   : > { %v1398_v2 = vpop.f32.mrf.mxu2  ;;  %2619 = vmatpush.bf16.msrb.mxu0 %v3913_v4  ;;  %v4080_v4 = vld [vmem:[#allocation4 + $0x220] sm:$0xf]  ;;  %v4708_v36 = vld [vmem:[#allocation4 + $0x3cc] sm:$0xf0] }
 0x14e   : > { %v1399_v8 = vadd.f32 %v1398_v2, %v1380_v61  ;;  %v1417_v7 = vpop.f32.mrf.mxu3  ;;  %2564 = vmatpush.bf16.msra.mxu1 %v4005_v29  ;;  %v4597_v61 = vld [vmem:[#allocation4 + $0x54] sm:$0xf0]  ;;  %v4081_v11 = vor.u32 %v4656_v6, %v4080_v4 }
 0x14f   : > { %v1431_v15 = vpop.f32.mrf.mxu0  ;;  %v3849_v0 = vor.u32 %v4597_v61, %v3848_v38  ;;  %2509 = vmatpush.bf16.msrb.mxu2 %v4097_v57  ;;  %v4289_v57 = vor.u32 %v4708_v36, %v4288_v53  ;;  %v4040_v38 = vld [vmem:[#allocation4 + $0x1c8] sm:$0xf]  ;;  %v4645_v61 = vld [vmem:[#allocation4 + $0x1d4] sm:$0xf0]  ;;  %v4114_v53 = vld [vmem:[#allocation4 + $0x270] sm:$0xf0] }
 0x150   : > { %v1418_v14 = vadd.f32 %v1417_v7, %v1399_v8  ;;  %v1450_v50 = vpop.f32.mrf.mxu1  ;;  %v1432_v40 = vadd.f32 %v1431_v15, %v5135_v56  ;;  %v4622_v8 = vld [vmem:[#allocation4 + $0x124] sm:$0xf]  ;;  %v4593_v15 = vld [vmem:[#allocation4 + $0x34] sm:$0xf0]  ;;  %v3992_v36 = vld [vmem:[#allocation4 + $0x168] sm:$0xf] }
 0x151   : > { %2620 = vmatpush.bf16.msrb.mxu0 %v3897_v22  ;;  %v3957_v17 = vor.u32 %v4622_v8, %v3954_v13  ;;  %v4618_v22 = vld [vmem:[#allocation4 + $0x104] sm:$0xf] }
 0x152   : > { %v1660_v18 = vmul.f32 0.01, %v1418_v14  ;;  %2565 = vmatpush.bf16.msra.mxu1 %v3989_v34  ;;  %v1451_v55 = vadd.f32 %v1450_v50, %v1432_v40  ;;  %v4064_v50 = vld [vmem:[#allocation4 + $0x200] sm:$0xf]  ;;  %v4178_v40 = vld [vmem:[#allocation4 + $0x2f0] sm:$0xf0] }
 0x153   : > { %2510 = vmatpush.bf16.msrb.mxu2 %v4081_v11  ;;  %v4065_v21 = vor.u32 %v4652_v20, %v4064_v50  ;;  %v3930_v34 = vld [vmem:[#allocation4 + $0xf8] sm:$0xf0] }
 0x154   : > { %v1676_v58 = vmax.f32 %v1418_v14, %v1660_v18  ;;  %v3832_v14 = vld [vmem:[#allocation4 + $0x28] sm:$0xf] }
 0x155   : > { %v1467_v12 = vpop.f32.mrf.mxu2  ;;  %2621 = vmatpush.bf16.msrb.mxu0 %v3881_v30  ;;  %v3833_v43 = vor.u32 %v4593_v15, %v3832_v14  ;;  %v4304_v30 = vld [vmem:[#allocation4 + $0x3e0] sm:$0xf] }
 0x156   : > { %v5138_v42 = vpack.c.bf16 %v1676_v58, %v1672_v26  ;;  %v1468_v45 = vadd.f32 %v1467_v12, %v1449_v27  ;;  %v1486_v32 = vpop.f32.mrf.mxu3  ;;  %2566 = vmatpush.bf16.msra.mxu1 %v3973_v63  ;;  %v3938_v26 = vld [vmem:[#allocation4 + $0x110] sm:$0xf0]  ;;  %v3816_v27 = vld [vmem:[#allocation4 + $0x8] sm:$0xf]  ;;  %v4589_v58 = vld [vmem:[#allocation4 + $0x14] sm:$0xf0]  ;;  %v4165_v63 = vor.u32 %v4674_v54, %v4162_v60 }
 0x157   : > { %v1434_v41 = vpop.f32.mrf.mxu0  ;;  %v3941_v24 = vor.u32 %v4618_v22, %v3938_v26  ;;  %v3817_v28 = vor.u32 %v4589_v58, %v3816_v27  ;;  %2511 = vmatpush.bf16.msrb.mxu2 %v4065_v21  ;;  %v4607_v22 = vld [vmem:[#allocation4 + $0xac] sm:$0xf]  ;;  %v4256_v21 = vld [vmem:[#allocation4 + $0x380] sm:$0xf]  ;;  %v4700_v26 = vld [vmem:[#allocation4 + $0x38c] sm:$0xf0] }
 0x158   : > { %2479 = vmatmul.bf16.gmra.mxu0 %v5138_v42  ;;  %v1453_v49 = vpop.f32.mrf.mxu1  ;;  %v1487_v52 = vadd.f32 %v1486_v32, %v1468_v45  ;;  %v1435_v7 = vadd.f32 %v1434_v41, %v5135_v56  ;;  %v4712_v45 = vld [vmem:[#allocation4 + $0x3ec] sm:$0xf0]  ;;  %v4678_v32 = vld [vmem:[#allocation4 + $0x2e4] sm:$0xf]  ;;  %v4056_v41 = vld [vmem:[#allocation4 + $0x1e8] sm:$0xf] }
 0x159   : > { %2622 = vmatpush.bf16.msrb.mxu0 %v3865_v51  ;;  %v4305_v39 = vor.u32 %v4712_v45, %v4304_v30  ;;  %v4181_v47 = vor.u32 %v4678_v32, %v4178_v40  ;;  %v4057_v48 = vor.u32 %v4649_v44, %v4056_v41  ;;  %v4666_v27 = vld [vmem:[#allocation4 + $0x284] sm:$0xf]  ;;  %v4637_v30 = vld [vmem:[#allocation4 + $0x194] sm:$0xf0] }
 0x15a   : > { %v1649_v1 = vmul.f32 0.01, %v1487_v52  ;;  %2567 = vmatpush.bf16.msra.mxu1 %v3957_v17  ;;  %v1454_v23 = vadd.f32 %v1453_v49, %v1435_v7  ;;  %v4615_v49 = vld [vmem:[#allocation4 + $0xec] sm:$0xf]  ;;  %v4272_v7 = vld [vmem:[#allocation4 + $0x3a0] sm:$0xf] }
 0x15b   : > { %2523 = vmatpush.bf16.msrb.mxu3 %v4305_v39  ;;  %2580 = vmatpush.bf16.msra.mxu2 %v4181_v47  ;;  %v4024_v17 = vld [vmem:[#allocation4 + $0x1a8] sm:$0xf]  ;;  %v3882_v39 = vld [vmem:[#allocation4 + $0x98] sm:$0xf0]  ;;  %v4633_v54 = vld [vmem:[#allocation4 + $0x174] sm:$0xf0] }
 0x15c   : > { %v1665_v18 = vmax.f32 %v1487_v52, %v1649_v1  ;;  %v5151_v52 = vperm.slane %v5122_v31, 2  ;;  %v4611_v1 = vld [vmem:[#allocation4 + $0xcc] sm:$0xf]  ;;  %v3993_v60 = vor.u32 %v4633_v54, %v3992_v36 }
 0x15d   : > { %v1469_v62 = vpop.f32.mrf.mxu2  ;;  %2623 = vmatpush.bf16.msrb.mxu0 %v3849_v0  ;;  %v4041_v0 = vor.u32 %v4645_v61, %v4040_v38  ;;  %v4599_v38 = vld [vmem:[#allocation4 + $0x6c] sm:$0xf]  ;;  %v3866_v61 = vld [vmem:[#allocation4 + $0x78] sm:$0xf0] }
 0x15e   : > { %v1470_v2 = vadd.f32 %v1469_v62, %v1451_v55  ;;  %v1488_v3 = vpop.f32.mrf.mxu3  ;;  %2568 = vmatpush.bf16.msra.mxu1 %v3941_v24 }
 0x15f   : > { %v1436_v10 = vpop.f32.mrf.mxu0  ;;  %2524 = vmatpush.bf16.msrb.mxu3 %v4289_v57  ;;  %2581 = vmatpush.bf16.msra.mxu2 %v4165_v63  ;;  %v3869_v63 = vor.u32 %v4599_v38, %v3866_v61  ;;  %v4306_v38 = vld [vmem:[#allocation4 + $0x3f0] sm:$0xf0]  ;;  %v4184_v61 = vld [vmem:[#allocation4 + $0x2e8] sm:$0xf] }
 0x160   : > { %v1489_v9 = vadd.f32 %v1488_v3, %v1470_v2  ;;  %v1455_v16 = vpop.f32.mrf.mxu1  ;;  %v1437_v33 = vadd.f32 %v1436_v10, %v5135_v56  ;;  %v3933_v56 = vor.u32 %v4615_v49, %v3930_v34  ;;  %v3914_v2 = vld [vmem:[#allocation4 + $0xd8] sm:$0xf0]  ;;  %v4670_v10 = vld [vmem:[#allocation4 + $0x2a4] sm:$0xf] }
 0x161   : > { %2624 = vmatpush.bf16.msrb.mxu0 %v3833_v43  ;;  %v3917_v8 = vor.u32 %v4611_v1, %v3914_v2  ;;  %v4641_v43 = vld [vmem:[#allocation4 + $0x1b4] sm:$0xf0]  ;;  %v4662_v49 = vld [vmem:[#allocation4 + $0x264] sm:$0xf]  ;;  %v4692_v1 = vld [vmem:[#allocation4 + $0x34c] sm:$0xf0] }
 0x162   : > { %v1653_v19 = vmul.f32 0.01, %v1489_v9  ;;  %v1456_v55 = vadd.f32 %v1455_v16, %v1437_v33  ;;  %v4146_v16 = vld [vmem:[#allocation4 + $0x2b0] sm:$0xf0]  ;;  %v4025_v20 = vor.u32 %v4641_v43, %v4024_v17  ;;  %v4117_v57 = vor.u32 %v4662_v49, %v4114_v53  ;;  %v4658_v2 = vld [vmem:[#allocation4 + $0x244] sm:$0xf] }
 0x163   : > { %v4149_v50 = vor.u32 %v4670_v10, %v4146_v16  ;;  %v3818_v53 = vld [vmem:[#allocation4 + $0x18] sm:$0xf0] }
 0x164   : > { %v1669_v25 = vmax.f32 %v1489_v9, %v1653_v19  ;;  %v4704_v9 = vld [vmem:[#allocation4 + $0x3ac] sm:$0xf0] }
 0x165   : > { %v1472_v5 = vpop.f32.mrf.mxu2  ;;  %2625 = vmatpush.bf16.msrb.mxu0 %v3817_v28  ;;  %v4273_v15 = vor.u32 %v4704_v9, %v4272_v7  ;;  %2582 = vmatpush.bf16.msra.mxu2 %v4149_v50  ;;  %v4257_v28 = vor.u32 %v4700_v26, %v4256_v21  ;;  %v4629_v7 = vld [vmem:[#allocation4 + $0x154] sm:$0xf0]  ;;  %v4208_v50 = vld [vmem:[#allocation4 + $0x320] sm:$0xf]  ;;  %v4082_v21 = vld [vmem:[#allocation4 + $0x230] sm:$0xf0] }
 0x166   : > { %v5143_v59 = vpack.c.bf16 %v1669_v25, %v1665_v18  ;;  %v1473_v12 = vadd.f32 %v1472_v5, %v1454_v23  ;;  %v1491_v29 = vpop.f32.mrf.mxu3  ;;  %v3898_v18 = vld [vmem:[#allocation4 + $0xb8] sm:$0xf0]  ;;  %v3960_v26 = vld [vmem:[#allocation4 + $0x128] sm:$0xf] }
 0x167   : > { %v1505_v35 = vpop.f32.mrf.mxu0  ;;  %2525 = vmatpush.bf16.msrb.mxu3 %v4273_v15  ;;  %v3901_v25 = vor.u32 %v4607_v22, %v3898_v18 }
 0x168   : > { %2493 = vmatmul.bf16.vlgmr.msrb.gmra.mxu1 %v5143_v59  ;;  %2550 = vmatmul.bf16.vlgmr.msra.gmra.mxu0 %v5130_v37  ;;  %v1524_v46 = vpop.f32.mrf.mxu1  ;;  %v5148_v51 = vadd.f32 %v1491_v29, %v1473_v12  ;;  %v1506_v11 = vadd.f32 %v1505_v35, %v5151_v52  ;;  %v4130_v12 = vld [vmem:[#allocation4 + $0x290] sm:$0xf0]  ;;  %v4008_v29 = vld [vmem:[#allocation4 + $0x188] sm:$0xf]  ;;  %v4603_v35 = vld [vmem:[#allocation4 + $0x8c] sm:$0xf] }
 0x169   : > { %2637 = vmatpush.bf16.msrb.mxu1 %v4057_v48  ;;  %2694 = vmatpush.bf16.msra.mxu0 %v3933_v56  ;;  %v4133_v32 = vor.u32 %v4666_v27, %v4130_v12  ;;  %v4009_v33 = vor.u32 %v4637_v30, %v4008_v29  ;;  %v3885_v47 = vor.u32 %v4603_v35, %v3882_v39  ;;  %v4696_v48 = vld [vmem:[#allocation4 + $0x36c] sm:$0xf0]  ;;  %v4625_v27 = vld [vmem:[#allocation4 + $0x134] sm:$0xf0] }
 0x16a   : > { %v1657_v3 = vmul.f32 0.01, %v5148_v51  ;;  %v1525_v5 = vadd.f32 %v1524_v46, %v1506_v11  ;;  %v4240_v46 = vld [vmem:[#allocation4 + $0x360] sm:$0xf] }
 0x16b   : > { %2526 = vmatpush.bf16.msrb.mxu3 %v4257_v28  ;;  %2583 = vmatpush.bf16.msra.mxu2 %v4133_v32  ;;  %v4241_v56 = vor.u32 %v4696_v48, %v4240_v46  ;;  %v3834_v28 = vld [vmem:[#allocation4 + $0x38] sm:$0xf0]  ;;  %v4684_v32 = vld [vmem:[#allocation4 + $0x30c] sm:$0xf0]  ;;  %v3944_v46 = vld [vmem:[#allocation4 + $0x108] sm:$0xf] }
 0x16c   : > { %v1673_v58 = vmax.f32 %v5148_v51, %v1657_v3  ;;  %v4621_v48 = vld [vmem:[#allocation4 + $0x114] sm:$0xf0] }
 0x16d   : > { %v1474_v62 = vpop.f32.mrf.mxu2  ;;  %2638 = vmatpush.bf16.msrb.mxu1 %v4041_v0  ;;  %2695 = vmatpush.bf16.msra.mxu0 %v3917_v8  ;;  %v4224_v0 = vld [vmem:[#allocation4 + $0x340] sm:$0xf]  ;;  %v3976_v8 = vld [vmem:[#allocation4 + $0x148] sm:$0xf] }
 0x16e   : > { %v1475_v4 = vadd.f32 %v1474_v62, %v1456_v55  ;;  %v1493_v6 = vpop.f32.mrf.mxu3  ;;  %v3977_v11 = vor.u32 %v4629_v7, %v3976_v8  ;;  %v4706_v7 = vld [vmem:[#allocation4 + $0x3c4] sm:$0xf] }
 0x16f   : > { %v1507_v14 = vpop.f32.mrf.mxu0  ;;  %2527 = vmatpush.bf16.msrb.mxu3 %v4241_v56  ;;  %2584 = vmatpush.bf16.msra.mxu2 %v4117_v57  ;;  %v4587_v56 = vld [vmem:[#allocation4 + $0xc] sm:$0xf] }
 0x170   : > { %v1494_v13 = vadd.f32 %v1493_v6, %v1475_v4  ;;  %v1526_v19 = vpop.f32.mrf.mxu1  ;;  %v1508_v34 = vadd.f32 %v1507_v14, %v5151_v52  ;;  %v4225_v4 = vor.u32 %v4692_v1, %v4224_v0  ;;  %v4098_v6 = vld [vmem:[#allocation4 + $0x250] sm:$0xf0]  ;;  %v3850_v14 = vld [vmem:[#allocation4 + $0x58] sm:$0xf0]  ;;  %v4681_v1 = vld [vmem:[#allocation4 + $0x2f4] sm:$0xf0] }
 0x171   : > { %2639 = vmatpush.bf16.msrb.mxu1 %v4025_v20  ;;  %2696 = vmatpush.bf16.msra.mxu0 %v3901_v25  ;;  %v4101_v10 = vor.u32 %v4658_v2, %v4098_v6  ;;  %v4654_v20 = vld [vmem:[#allocation4 + $0x224] sm:$0xf]  ;;  %v4647_v2 = vld [vmem:[#allocation4 + $0x1ec] sm:$0xf] }
 0x172   : > { %v1661_v23 = vmul.f32 0.01, %v1494_v13  ;;  %v1527_v3 = vadd.f32 %v1526_v19, %v1508_v34  ;;  %v4688_v19 = vld [vmem:[#allocation4 + $0x32c] sm:$0xf0] }
 0x173   : > { %2528 = vmatpush.bf16.msrb.mxu3 %v4225_v4  ;;  %2585 = vmatpush.bf16.msra.mxu2 %v4101_v10  ;;  %v4209_v25 = vor.u32 %v4688_v19, %v4208_v50  ;;  %v4185_v4 = vor.u32 %v4681_v1, %v4184_v61  ;;  %v3994_v1 = vld [vmem:[#allocation4 + $0x178] sm:$0xf0] }
 0x174   : > { %v1677_v24 = vmax.f32 %v1494_v13, %v1661_v23  ;;  %v4595_v13 = vld [vmem:[#allocation4 + $0x4c] sm:$0xf] }
 0x175   : > { %v1543_v45 = vpop.f32.mrf.mxu2  ;;  %2640 = vmatpush.bf16.msrb.mxu1 %v4009_v33  ;;  %2697 = vmatpush.bf16.msra.mxu0 %v3885_v47  ;;  %v3853_v43 = vor.u32 %v4595_v13, %v3850_v14  ;;  %v4650_v33 = vld [vmem:[#allocation4 + $0x204] sm:$0xf]  ;;  %v4066_v47 = vld [vmem:[#allocation4 + $0x210] sm:$0xf0]  ;;  %v4677_v13 = vld [vmem:[#allocation4 + $0x2d4] sm:$0xf0] }
 0x176   : > { %v5156_v40 = vpack.c.bf16 %v1677_v24, %v1673_v58  ;;  %v1544_v41 = vadd.f32 %v1543_v45, %v1525_v5  ;;  %v1562_v44 = vpop.f32.mrf.mxu3  ;;  %v4085_v58 = vor.u32 %v4654_v20, %v4082_v21  ;;  %v3961_v5 = vor.u32 %v4625_v27, %v3960_v26  ;;  %v4591_v24 = vld [vmem:[#allocation4 + $0x2c] sm:$0xf]  ;;  %v4192_v45 = vld [vmem:[#allocation4 + $0x300] sm:$0xf]  ;;  %v4152_v21 = vld [vmem:[#allocation4 + $0x2a8] sm:$0xf] }
 0x177   : > { %v1510_v51 = vpop.f32.mrf.mxu0  ;;  %2529 = vmatpush.bf16.msrb.mxu3 %v4209_v25  ;;  %v3837_v29 = vor.u32 %v4591_v24, %v3834_v28  ;;  %v4069_v34 = vor.u32 %v4650_v33, %v4066_v47  ;;  %v4643_v14 = vld [vmem:[#allocation4 + $0x1cc] sm:$0xf]  ;;  %v5173_v20 = vperm.slane %v5122_v31, 3  ;;  %v4274_v25 = vld [vmem:[#allocation4 + $0x3b0] sm:$0xf0] }
 0x178   : > { %2498 = vmatmul.bf16.gmra.mxu1 %v5156_v40  ;;  %2555 = vmatmul.bf16.gmra.mxu0 %v5138_v42  ;;  %v1529_v55 = vpop.f32.mrf.mxu1  ;;  %v5161_v62 = vadd.f32 %v1562_v44, %v1544_v41  ;;  %v1511_v22 = vadd.f32 %v1510_v51, %v5151_v52  ;;  %v4193_v44 = vor.u32 %v4684_v32, %v4192_v45  ;;  %v4026_v24 = vld [vmem:[#allocation4 + $0x1b8] sm:$0xf0]  ;;  %v4698_v45 = vld [vmem:[#allocation4 + $0x384] sm:$0xf]  ;;  %v4258_v32 = vld [vmem:[#allocation4 + $0x390] sm:$0xf0] }
 0x179   : > { %2641 = vmatpush.bf16.msrb.mxu1 %v3993_v60  ;;  %2698 = vmatpush.bf16.msra.mxu0 %v3869_v63  ;;  %v3945_v51 = vor.u32 %v4621_v48, %v3944_v46  ;;  %v3821_v60 = vor.u32 %v4587_v56, %v3818_v53  ;;  %v4136_v33 = vld [vmem:[#allocation4 + $0x288] sm:$0xf]  ;;  %v4635_v47 = vld [vmem:[#allocation4 + $0x18c] sm:$0xf]  ;;  %v4010_v46 = vld [vmem:[#allocation4 + $0x198] sm:$0xf0] }
 0x17a   : > { %v1650_v15 = vmul.f32 0.01, %v5161_v62  ;;  %2586 = vmatpush.bf16.msra.mxu2 %v4085_v58  ;;  %v1530_v39 = vadd.f32 %v1529_v55, %v1511_v22  ;;  %v4710_v55 = vld [vmem:[#allocation4 + $0x3e4] sm:$0xf]  ;;  %v4673_v58 = vld [vmem:[#allocation4 + $0x2b4] sm:$0xf0] }
 0x17b   : > { %2530 = vmatpush.bf16.msrb.mxu3 %v4193_v44  ;;  %v4309_v0 = vor.u32 %v4710_v55, %v4306_v38  ;;  %v4669_v44 = vld [vmem:[#allocation4 + $0x294] sm:$0xf0]  ;;  %v4120_v55 = vld [vmem:[#allocation4 + $0x268] sm:$0xf] }
 0x17c   : > { %v1666_v35 = vmax.f32 %v5161_v62, %v1650_v15  ;;  %v4042_v15 = vld [vmem:[#allocation4 + $0x1d8] sm:$0xf0] }
 0x17d   : > { %v1545_v9 = vpop.f32.mrf.mxu2  ;;  %2642 = vmatpush.bf16.msrb.mxu1 %v3977_v11  ;;  %2699 = vmatpush.bf16.msra.mxu0 %v3853_v43  ;;  %v4045_v50 = vor.u32 %v4643_v14, %v4042_v15  ;;  %v4686_v14 = vld [vmem:[#allocation4 + $0x324] sm:$0xf]  ;;  %v4210_v15 = vld [vmem:[#allocation4 + $0x330] sm:$0xf0] }
 0x17e   : > { %v1546_v16 = vadd.f32 %v1545_v9, %v1527_v3  ;;  %v1564_v17 = vpop.f32.mrf.mxu3  ;;  %2587 = vmatpush.bf16.msra.mxu2 %v4069_v34  ;;  %v4058_v3 = vld [vmem:[#allocation4 + $0x1f8] sm:$0xf0]  ;;  %v4168_v9 = vld [vmem:[#allocation4 + $0x2c8] sm:$0xf]  ;;  %v4013_v34 = vor.u32 %v4635_v47, %v4010_v46 }
 0x17f   : > { %v1512_v23 = vpop.f32.mrf.mxu0  ;;  %v4061_v6 = vor.u32 %v4647_v2, %v4058_v3  ;;  %2599 = vmatpush.bf16.msra.mxu3 %v4309_v0  ;;  %v4169_v43 = vor.u32 %v4677_v13, %v4168_v9  ;;  %v4631_v0 = vld [vmem:[#allocation4 + $0x16c] sm:$0xf]  ;;  %v3978_v13 = vld [vmem:[#allocation4 + $0x158] sm:$0xf0] }
 0x180   : > { %v1565_v18 = vadd.f32 %v1564_v17, %v1546_v16  ;;  %v1531_v30 = vpop.f32.mrf.mxu1  ;;  %v1513_v62 = vadd.f32 %v1512_v23, %v5151_v52  ;;  %v4290_v52 = vld [vmem:[#allocation4 + $0x3d0] sm:$0xf0]  ;;  %v4702_v23 = vld [vmem:[#allocation4 + $0x3a4] sm:$0xf]  ;;  %v3997_v3 = vor.u32 %v4631_v0, %v3994_v1  ;;  %v4627_v9 = vld [vmem:[#allocation4 + $0x14c] sm:$0xf] }
 0x181   : > { %2643 = vmatpush.bf16.msrb.mxu1 %v3961_v5  ;;  %2700 = vmatpush.bf16.msra.mxu0 %v3837_v29  ;;  %v4293_v11 = vor.u32 %v4706_v7, %v4290_v52  ;;  %v4277_v27 = vor.u32 %v4702_v23, %v4274_v25  ;;  %v4639_v5 = vld [vmem:[#allocation4 + $0x1ac] sm:$0xf]  ;;  %v4661_v52 = vld [vmem:[#allocation4 + $0x254] sm:$0xf0]  ;;  %v3962_v23 = vld [vmem:[#allocation4 + $0x138] sm:$0xf0] }
 0x182   : > { %v1654_v12 = vmul.f32 0.01, %v1565_v18  ;;  %v1532_v10 = vadd.f32 %v1531_v30, %v1513_v62  ;;  %v4029_v29 = vor.u32 %v4639_v5, %v4026_v24  ;;  %v4682_v5 = vld [vmem:[#allocation4 + $0x304] sm:$0xf]  ;;  %v4194_v24 = vld [vmem:[#allocation4 + $0x310] sm:$0xf0] }
 0x183   : > { %2600 = vmatpush.bf16.msra.mxu3 %v4293_v11  ;;  %v3946_v47 = vld [vmem:[#allocation4 + $0x118] sm:$0xf0]  ;;  %v4296_v0 = vld [vmem:[#allocation4 + $0x3c8] sm:$0xf]  ;;  %v4709_v1 = vld [vmem:[#allocation4 + $0x3d4] sm:$0xf0] }
 0x184   : > { %v1670_v41 = vmax.f32 %v1565_v18, %v1654_v12  ;;  %v4153_v12 = vor.u32 %v4673_v58, %v4152_v21 }
 0x185   : > { %v1548_v49 = vpop.f32.mrf.mxu2  ;;  %2644 = vmatpush.bf16.msrb.mxu1 %v3945_v51  ;;  %2701 = vmatpush.bf16.msra.mxu0 %v3821_v60  ;;  %v4242_v60 = vld [vmem:[#allocation4 + $0x370] sm:$0xf0] }
 0x186   : > { %v5166_v36 = vpack.c.bf16 %v1670_v41, %v1666_v35  ;;  %v1549_v54 = vadd.f32 %v1548_v49, %v1530_v39  ;;  %v1567_v57 = vpop.f32.mrf.mxu3  ;;  %v4261_v41 = vor.u32 %v4698_v45, %v4258_v32  ;;  %v4137_v49 = vor.u32 %v4669_v44, %v4136_v33  ;;  %v4072_v32 = vld [vmem:[#allocation4 + $0x208] sm:$0xf]  ;;  %v4653_v33 = vld [vmem:[#allocation4 + $0x214] sm:$0xf0] }
 0x187   : > { %v1581_v63 = vpop.f32.mrf.mxu0  ;;  %2601 = vmatpush.bf16.msra.mxu3 %v4277_v27  ;;  %v4197_v45 = vor.u32 %v4682_v5, %v4194_v24  ;;  %v4073_v44 = vor.u32 %v4653_v33, %v4072_v32  ;;  %v4248_v5 = vld [vmem:[#allocation4 + $0x368] sm:$0xf]  ;;  %v4697_v24 = vld [vmem:[#allocation4 + $0x374] sm:$0xf0]  ;;  %v4659_v33 = vld [vmem:[#allocation4 + $0x24c] sm:$0xf] }
 0x188   : > { %2512 = vmatmul.bf16.vlgmr.msrb.gmra.mxu2 %v5166_v36  ;;  %2569 = vmatmul.bf16.vlgmr.msra.gmra.mxu1 %v5143_v59  ;;  %v1568_v8 = vadd.f32 %v1567_v57, %v1549_v54  ;;  %v1600_v16 = vpop.f32.mrf.mxu1  ;;  %v1582_v30 = vadd.f32 %v1581_v63, %v5173_v20  ;;  %v4694_v57 = vld [vmem:[#allocation4 + $0x364] sm:$0xf]  ;;  %v4665_v63 = vld [vmem:[#allocation4 + $0x274] sm:$0xf0] }
 0x189   : > { %2626 = vmatmul.bf16.vlgmr.msrb.gmra.mxu0 %v5130_v37  ;;  %2656 = vmatpush.bf16.msrb.mxu2 %v4185_v4  ;;  %v4245_v62 = vor.u32 %v4694_v57, %v4242_v60  ;;  %v4121_v2 = vor.u32 %v4665_v63, %v4120_v55  ;;  %v4690_v4 = vld [vmem:[#allocation4 + $0x344] sm:$0xf]  ;;  %v4713_v57 = vld [vmem:[#allocation4 + $0x3f4] sm:$0xf0]  ;;  %v4679_v60 = vld [vmem:[#allocation4 + $0x2ec] sm:$0xf] }
 0x18a   : > { %2713 = vmatpush.bf16.msra.mxu1 %v4061_v6  ;;  %v1658_v19 = vmul.f32 0.01, %v1568_v8  ;;  %v1601_v51 = vadd.f32 %v1600_v16, %v1582_v30  ;;  %v4226_v6 = vld [vmem:[#allocation4 + $0x350] sm:$0xf0] }
 0x18b   : > { %2602 = vmatpush.bf16.msra.mxu3 %v4261_v41  ;;  %v4229_v7 = vor.u32 %v4690_v4, %v4226_v6  ;;  %v4675_v4 = vld [vmem:[#allocation4 + $0x2cc] sm:$0xf] }
 0x18c   : > { %v1674_v35 = vmax.f32 %v1568_v8, %v1658_v19  ;;  %v4104_v8 = vld [vmem:[#allocation4 + $0x248] sm:$0xf]  ;;  %v4657_v19 = vld [vmem:[#allocation4 + $0x234] sm:$0xf0] }
 0x18d   : > { %v1550_v17 = vpop.f32.mrf.mxu2  ;;  %2657 = vmatpush.bf16.msrb.mxu2 %v4169_v43  ;;  %v4105_v11 = vor.u32 %v4661_v52, %v4104_v8  ;;  %v3981_v43 = vor.u32 %v4627_v9, %v3978_v13  ;;  %v4671_v13 = vld [vmem:[#allocation4 + $0x2ac] sm:$0xf] }
 0x18e   : > { %v1551_v22 = vadd.f32 %v1550_v17, %v1532_v10  ;;  %v1569_v18 = vpop.f32.mrf.mxu3  ;;  %2714 = vmatpush.bf16.msra.mxu1 %v4045_v50  ;;  %v4088_v50 = vld [vmem:[#allocation4 + $0x228] sm:$0xf] }
 0x18f   : > { %v1583_v28 = vpop.f32.mrf.mxu0  ;;  %2603 = vmatpush.bf16.msra.mxu3 %v4245_v62  ;;  %v4089_v27 = vor.u32 %v4657_v19, %v4088_v50  ;;  %v4186_v62 = vld [vmem:[#allocation4 + $0x2f8] sm:$0xf0] }
 0x190   : > { %v1570_v26 = vadd.f32 %v1569_v18, %v1551_v22  ;;  %v1602_v54 = vpop.f32.mrf.mxu1  ;;  %v1584_v38 = vadd.f32 %v1583_v28, %v5173_v20  ;;  %v4623_v22 = vld [vmem:[#allocation4 + $0x12c] sm:$0xf]  ;;  %v4189_v63 = vor.u32 %v4679_v60, %v4186_v62 }
 0x191   : > { %2658 = vmatpush.bf16.msrb.mxu2 %v4153_v12  ;;  %v3965_v58 = vor.u32 %v4623_v22, %v3962_v23  ;;  %v4667_v23 = vld [vmem:[#allocation4 + $0x28c] sm:$0xf] }
 0x192   : > { %v1662_v31 = vmul.f32 0.01, %v1570_v26  ;;  %2715 = vmatpush.bf16.msra.mxu1 %v4029_v29  ;;  %v1603_v16 = vadd.f32 %v1602_v54, %v1584_v38  ;;  %v4312_v54 = vld [vmem:[#allocation4 + $0x3e8] sm:$0xf]  ;;  %v4707_v62 = vld [vmem:[#allocation4 + $0x3cc] sm:$0xf] }
 0x193   : > { %2604 = vmatpush.bf16.msra.mxu3 %v4229_v7 }
 0x194   : > { %v1678_v39 = vmax.f32 %v1570_v26, %v1662_v31  ;;  %v4213_v26 = vor.u32 %v4686_v14, %v4210_v15  ;;  %v4154_v15 = vld [vmem:[#allocation4 + $0x2b8] sm:$0xf0] }
 0x195   : > { %v1619_v48 = vpop.f32.mrf.mxu2  ;;  %2659 = vmatpush.bf16.msrb.mxu2 %v4137_v49  ;;  %v4157_v19 = vor.u32 %v4671_v13, %v4154_v15  ;;  %v4218_v13 = vld [vmem:[#allocation4 + $0x338] sm:$0xf0] }
 0x196   : > { %v5176_v56 = vpack.c.bf16 %v1678_v39, %v1674_v35  ;;  %v1638_v53 = vpop.f32.mrf.mxu3  ;;  %2716 = vmatpush.bf16.msra.mxu1 %v4013_v34  ;;  %v1620_v61 = vadd.f32 %v1619_v48, %v1601_v51  ;;  %v4619_v35 = vld [vmem:[#allocation4 + $0x10c] sm:$0xf]  ;;  %v4202_v15 = vld [vmem:[#allocation4 + $0x318] sm:$0xf0] }
 0x197   : > { %v1586_v10 = vpop.f32.mrf.mxu0  ;;  %2605 = vmatpush.bf16.msra.mxu3 %v4213_v26  ;;  %v3949_v49 = vor.u32 %v4619_v35, %v3946_v47  ;;  %v4106_v35 = vld [vmem:[#allocation4 + $0x258] sm:$0xf0]  ;;  %v4655_v47 = vld [vmem:[#allocation4 + $0x22c] sm:$0xf] }
 0x198   : > { %2517 = vmatmul.bf16.gmra.mxu2 %v5176_v56  ;;  %2574 = vmatmul.bf16.gmra.mxu1 %v5156_v40  ;;  %v1639_v17 = vadd.f32 %v1638_v53, %v1620_v61  ;;  %v1605_v29 = vpop.f32.mrf.mxu1  ;;  %v1587_v30 = vadd.f32 %v1586_v10, %v5173_v20  ;;  %v4313_v61 = vor.u32 %v4713_v57, %v4312_v54  ;;  %v4280_v10 = vld [vmem:[#allocation4 + $0x3a8] sm:$0xf]  ;;  %v4651_v54 = vld [vmem:[#allocation4 + $0x20c] sm:$0xf]  ;;  %v4074_v57 = vld [vmem:[#allocation4 + $0x218] sm:$0xf0] }
 0x199   : > { %2631 = vmatmul.bf16.gmra.mxu0 %v5138_v42  ;;  %2660 = vmatpush.bf16.msrb.mxu2 %v4121_v2  ;;  %v4297_v2 = vor.u32 %v4709_v1, %v4296_v0  ;;  %v4077_v60 = vor.u32 %v4651_v54, %v4074_v57  ;;  %v4703_v1 = vld [vmem:[#allocation4 + $0x3ac] sm:$0xf] }
 0x19a   : > { %2717 = vmatpush.bf16.msra.mxu1 %v3997_v3  ;;  %v1651_v28 = vmul.f32 0.01, %v1639_v17  ;;  %v1606_v34 = vadd.f32 %v1605_v29, %v1587_v30  ;;  %v4122_v29 = vld [vmem:[#allocation4 + $0x278] sm:$0xf0] }
 0x19b   : > { %2606 = vmatpush.bf16.msra.mxu3 %v4197_v45  ;;  %v4693_v45 = vld [vmem:[#allocation4 + $0x354] sm:$0xf0] }
 0x19c   : > { %v1667_v39 = vmax.f32 %v1639_v17, %v1651_v28  ;;  %v4701_v17 = vld [vmem:[#allocation4 + $0x394] sm:$0xf0]  ;;  %v4663_v28 = vld [vmem:[#allocation4 + $0x26c] sm:$0xf] }
 0x19d   : > { %v1621_v18 = vpop.f32.mrf.mxu2  ;;  %2661 = vmatpush.bf16.msrb.mxu2 %v4105_v11  ;;  %v4705_v11 = vld [vmem:[#allocation4 + $0x3b4] sm:$0xf0]  ;;  %v4125_v30 = vor.u32 %v4663_v28, %v4122_v29 }
 0x19e   : > { %v1622_v25 = vadd.f32 %v1621_v18, %v1603_v16  ;;  %v1640_v21 = vpop.f32.mrf.mxu3  ;;  %2718 = vmatpush.bf16.msra.mxu1 %v3981_v43  ;;  %v4264_v16 = vld [vmem:[#allocation4 + $0x388] sm:$0xf] }
 0x19f   : > { %v1588_v46 = vpop.f32.mrf.mxu0  ;;  %v4265_v18 = vor.u32 %v4701_v17, %v4264_v16  ;;  %v4720_v17 = vld [vmem:[%s5335_s7 + $0x30] sm:$0xff] }
 0x1a0   : > { %v1641_v12 = vadd.f32 %v1640_v21, %v1622_v25  ;;  %v1589_v55 = vadd.f32 %v1588_v46, %v5173_v20  ;;  %v1607_v3 = vpop.f32.mrf.mxu1  ;;  %v4170_v20 = vld [vmem:[#allocation4 + $0x2d8] sm:$0xf0] }
 0x1a1   : > { %2662 = vmatpush.bf16.msrb.mxu2 %v4089_v27  ;;  %v4173_v7 = vor.u32 %v4675_v4, %v4170_v20  ;;  %v4138_v25 = vld [vmem:[#allocation4 + $0x298] sm:$0xf0]  ;;  %v4699_v4 = vld [vmem:[#allocation4 + $0x38c] sm:$0xf] }
 0x1a2   : > { %v1655_v31 = vmul.f32 0.01, %v1641_v12  ;;  %2719 = vmatpush.bf16.msra.mxu1 %v3965_v58  ;;  %v1608_v6 = vadd.f32 %v1607_v3, %v1589_v55  ;;  %v4141_v27 = vor.u32 %v4667_v23, %v4138_v25  ;;  %v4711_v55 = vld [vmem:[#allocation4 + $0x3ec] sm:$0xf]  ;;  %v4266_v20 = vld [vmem:[#allocation4 + $0x398] sm:$0xf0] }
 0x1a3   : > { %v4716_v23 = vld [vmem:[%s5335_s7 + $0x10] sm:$0xff] }
 0x1a4   : > { %v1671_v41 = vmax.f32 %v1641_v12, %v1655_v31  ;;  %v4249_v12 = vor.u32 %v4697_v24, %v4248_v5  ;;  %v4232_v31 = vld [vmem:[#allocation4 + $0x348] sm:$0xf]  ;;  %v4729_v24 = vld [vmem:[%s5335_s7 + $0x78] sm:$0xff] }
 0x1a5   : > { %v1624_v48 = vpop.f32.mrf.mxu2  ;;  %2663 = vmatpush.bf16.msrb.mxu2 %v4073_v44  ;;  %v4233_v32 = vor.u32 %v4693_v45, %v4232_v31  ;;  %v4689_v44 = vld [vmem:[#allocation4 + $0x334] sm:$0xf0] }
 0x1a6   : > { %v5183_v51 = vpack.c.bf16 %v1671_v41, %v1667_v39  ;;  %v1643_v53 = vpop.f32.mrf.mxu3  ;;  %2720 = vmatpush.bf16.msra.mxu1 %v3949_v49  ;;  %v1625_v38 = vadd.f32 %v1624_v48, %v1606_v34  ;;  %v4109_v39 = vor.u32 %v4659_v33, %v4106_v35  ;;  %v4216_v41 = vld [vmem:[#allocation4 + $0x328] sm:$0xf]  ;;  %v4090_v48 = vld [vmem:[#allocation4 + $0x238] sm:$0xf0]  ;;  %v4685_v34 = vld [vmem:[#allocation4 + $0x314] sm:$0xf0] }
 0x1a7   : > { %v4217_v46 = vor.u32 %v4689_v44, %v4216_v41  ;;  %v4200_v49 = vld [vmem:[#allocation4 + $0x308] sm:$0xf]  ;;  %v4726_v33 = vld [vmem:[%s5335_s7 + $0x60] sm:$0xff]  ;;  %v4725_v44 = vld [vmem:[%s5335_s7 + $0x58] sm:$0xff] }
 0x1a8   : > { %2531 = vmatmul.bf16.vlgmr.msrb.gmra.mxu3 %v5183_v51  ;;  %2588 = vmatmul.bf16.vlgmr.msra.gmra.mxu2 %v5166_v36  ;;  %v1644_v8 = vadd.f32 %v1643_v53, %v1625_v38  ;;  %v4093_v53 = vor.u32 %v4655_v47, %v4090_v48  ;;  %v4314_v38 = vld [vmem:[#allocation4 + $0x3f8] sm:$0xf0] }
 0x1a9   : > { %2645 = vmatmul.bf16.vlgmr.msrb.gmra.mxu1 %v5143_v59  ;;  %2702 = vmatmul.bf16.vlgmr.msra.gmra.mxu0 %v5130_v37  ;;  %v4281_v37 = vor.u32 %v4705_v11, %v4280_v10  ;;  %v4687_v11 = vld [vmem:[#allocation4 + $0x32c] sm:$0xf] }
 0x1aa   : > { %2675 = vmatpush.bf16.msrb.mxu3 %v4313_v61  ;;  %2732 = vmatpush.bf16.msra.mxu2 %v4189_v63  ;;  %v1659_v43 = vmul.f32 0.01, %v1644_v8  ;;  %v4317_v61 = vor.u32 %v4711_v55, %v4314_v38  ;;  %v4298_v63 = vld [vmem:[#allocation4 + $0x3d8] sm:$0xf0] }
 0x1ab   : > { %v4301_v0 = vor.u32 %v4707_v62, %v4298_v63  ;;  %3089 = vmatpush.bf16.msrb.mxu1 %v4729_v24 }
 0x1ac   : > { %v1675_v21 = vmax.f32 %v1644_v8, %v1659_v43  ;;  %v4695_v8 = vld [vmem:[#allocation4 + $0x36c] sm:$0xf] }
 0x1ad   : > { %v1626_v52 = vpop.f32.mrf.mxu2  ;;  %v4719_v43 = vld [vmem:[%s5335_s7 + $0x28] sm:$0xff] }
 0x1ae   : > { %v1627_v9 = vadd.f32 %v1626_v52, %v1608_v6  ;;  %2676 = vmatpush.bf16.msrb.mxu3 %v4297_v2  ;;  %v1645_v14 = vpop.f32.mrf.mxu3  ;;  %2733 = vmatpush.bf16.msra.mxu2 %v4173_v7  ;;  %v4282_v2 = vld [vmem:[#allocation4 + $0x3b8] sm:$0xf0]  ;;  %v4269_v6 = vor.u32 %v4699_v4, %v4266_v20 }
 0x1af   : > { %v4285_v3 = vor.u32 %v4703_v1, %v4282_v2  ;;  %v4250_v7 = vld [vmem:[#allocation4 + $0x378] sm:$0xf0]  ;;  %v4722_v2 = vld [vmem:[%s5335_s7 + $0x40] sm:$0xff] }
 0x1b0   : > { %v1646_v50 = vadd.f32 %v1645_v14, %v1627_v9  ;;  %v4253_v52 = vor.u32 %v4695_v8, %v4250_v7  ;;  %v4691_v9 = vld [vmem:[#allocation4 + $0x34c] sm:$0xf]  ;;  %v4221_v14 = vor.u32 %v4687_v11, %v4218_v13  ;;  %v4736_v13 = vld [vmem:[%s5335_s7 + $0xb0] sm:$0xff] }
 0x1b2   : > { %v1663_v22 = vmul.f32 0.01, %v1646_v50  ;;  %2677 = vmatpush.bf16.msrb.mxu3 %v4281_v37  ;;  %2734 = vmatpush.bf16.msra.mxu2 %v4157_v19  ;;  %v4683_v37 = vld [vmem:[#allocation4 + $0x30c] sm:$0xf] }
 0x1b3   : > { %v4205_v16 = vor.u32 %v4683_v37, %v4202_v15 }
 0x1b4   : > { %v1679_v26 = vmax.f32 %v1646_v50, %v1663_v22  ;;  %v4717_v22 = vld [vmem:[%s5335_s7 + $0x18] sm:$0xff] }
 0x1b6   : > { %v5190_v58 = vpack.c.bf16 %v1679_v26, %v1675_v21  ;;  %2678 = vmatpush.bf16.msrb.mxu3 %v4265_v18  ;;  %2735 = vmatpush.bf16.msra.mxu2 %v4141_v27  ;;  %v4715_v26 = vld [vmem:[%s5335_s7 + $0x8] sm:$0xff] }
 0x1b8   : > { %2536 = vmatmul.bf16.gmra.mxu3 %v5190_v58  ;;  %2593 = vmatmul.bf16.gmra.mxu2 %v5176_v56 }
 0x1b9   : > { %2650 = vmatmul.bf16.gmra.mxu1 %v5156_v40  ;;  %2707 = vmatmul.bf16.gmra.mxu0 %v5138_v42  ;;  %v4201_v42 = vor.u32 %v4685_v34, %v4200_v49 }
 0x1ba   : > { %2679 = vmatpush.bf16.msrb.mxu3 %v4249_v12  ;;  %2736 = vmatpush.bf16.msra.mxu2 %v4125_v30  ;;  %v4728_v12 = vld [vmem:[%s5335_s7 + $0x70] sm:$0xff]  ;;  %v4727_v30 = vld [vmem:[%s5335_s7 + $0x68] sm:$0xff] }
 0x1bb   : > { %3090 = vmatpush.bf16.msrb.mxu1 %v4728_v12 }
 0x1be   : > { %2680 = vmatpush.bf16.msrb.mxu3 %v4233_v32  ;;  %2737 = vmatpush.bf16.msra.mxu2 %v4109_v39 }
 0x1bf   : > { %3091 = vmatpush.bf16.msrb.mxu1 %v4727_v30 }
 0x1c2   : > { %2681 = vmatpush.bf16.msrb.mxu3 %v4217_v46  ;;  %2738 = vmatpush.bf16.msra.mxu2 %v4093_v53 }
 0x1c3   : > { %3092 = vmatpush.bf16.msrb.mxu1 %v4726_v33 }
 0x1c5   : > { %v2475_v50 = vpop.f32.mrf.mxu0 }
 0x1c6   : > { %2682 = vmatpush.bf16.msrb.mxu3 %v4201_v42  ;;  %2739 = vmatpush.bf16.msra.mxu2 %v4077_v60  ;;  %v4724_v42 = vld [vmem:[%s5335_s7 + $0x50] sm:$0xff] }
 0x1c7   : > { %3093 = vmatpush.bf16.msrb.mxu1 %v4725_v44 }
 0x1c8   : > { %2607 = vmatmul.bf16.vlgmr.msra.gmra.mxu3 %v5183_v51  ;;  %2664 = vmatmul.bf16.vlgmr.msrb.gmra.mxu2 %v5166_v36 }
 0x1c9   : > { %2721 = vmatmul.bf16.vlgmr.msra.gmra.mxu1 %v5143_v59  ;;  %v4234_v59 = vld [vmem:[#allocation4 + $0x358] sm:$0xf0] }
 0x1ca   : > { %2751 = vmatpush.bf16.msra.mxu3 %v4317_v61  ;;  %v4237_v10 = vor.u32 %v4691_v9, %v4234_v59  ;;  %v4723_v61 = vld [vmem:[%s5335_s7 + $0x48] sm:$0xff] }
 0x1cb   : > { %3094 = vmatpush.bf16.msrb.mxu1 %v4724_v42 }
 0x1cd   : > { %v2477_v18 = vpop.f32.mrf.mxu0 }
 0x1ce   : > { %2752 = vmatpush.bf16.msra.mxu3 %v4301_v0 }
 0x1cf   : > { %3095 = vmatpush.bf16.msrb.mxu1 %v4723_v61 }
 0x1d2   : > { %2753 = vmatpush.bf16.msra.mxu3 %v4285_v3 }
 0x1d3   : > { %3096 = vmatpush.bf16.msrb.mxu1 %v4722_v2 }
 0x1d5   : > { %v2480_v27 = vpop.f32.mrf.mxu0 }
 0x1d6   : > { %2754 = vmatpush.bf16.msra.mxu3 %v4269_v6 }
 0x1d8   : > { %2612 = vmatmul.bf16.gmra.mxu3 %v5190_v58  ;;  %2669 = vmatmul.bf16.gmra.mxu2 %v5176_v56 }
 0x1d9   : > { %2726 = vmatmul.bf16.gmra.mxu1 %v5156_v40  ;;  %v4721_v40 = vld [vmem:[%s5335_s7 + $0x38] sm:$0xff] }
 0x1da   : > { %2755 = vmatpush.bf16.msra.mxu3 %v4253_v52  ;;  %3070 = vmatpush.bf16.msrb.mxu0 %v4721_v40  ;;  %v4737_v52 = vld [vmem:[%s5335_s7 + $0xb8] sm:$0xff] }
 0x1db   : > { %3108 = vmatpush.bf16.msrb.mxu2 %v4737_v52 }
 0x1dd   : > { %v2482_v29 = vpop.f32.mrf.mxu0 }
 0x1de   : > { %2756 = vmatpush.bf16.msra.mxu3 %v4237_v10  ;;  %3071 = vmatpush.bf16.msrb.mxu0 %v4720_v17 }
 0x1df   : > { %3109 = vmatpush.bf16.msrb.mxu2 %v4736_v13 }
 0x1e2   : > { %2757 = vmatpush.bf16.msra.mxu3 %v4221_v14  ;;  %3072 = vmatpush.bf16.msrb.mxu0 %v4719_v43  ;;  %v4735_v43 = vld [vmem:[%s5335_s7 + $0xa8] sm:$0xff] }
 0x1e3   : > { %3110 = vmatpush.bf16.msrb.mxu2 %v4735_v43 }
 0x1e5   : > { %v2551_v47 = vpop.f32.mrf.mxu0 }
 0x1e6   : > { %2758 = vmatpush.bf16.msra.mxu3 %v4205_v16 }
 0x1e8   : > { %2683 = vmatmul.bf16.vlgmr.msrb.gmra.mxu3 %v5183_v51  ;;  %2740 = vmatmul.bf16.vlgmr.msra.gmra.mxu2 %v5166_v36  ;;  %v2494_v36 = vpop.f32.mrf.mxu1 }
 0x1ed   : > { %v2553_v63 = vpop.f32.mrf.mxu0 }
 0x1f0   : > { %v2496_v25 = vpop.f32.mrf.mxu1 }
 0x1f5   : > { %v2556_v14 = vpop.f32.mrf.mxu0 }
 0x1f8   : > { %2688 = vmatmul.bf16.gmra.mxu3 %v5190_v58  ;;  %2745 = vmatmul.bf16.gmra.mxu2 %v5176_v56  ;;  %v4718_v56 = vld [vmem:[%s5335_s7 + $0x20] sm:$0xff]  ;;  %v2499_v5 = vpop.f32.mrf.mxu1 }
 0x1f9   : > { %3073 = vmatpush.bf16.msrb.mxu0 %v4718_v56 }
 0x1fd   : > { %3074 = vmatpush.bf16.msrb.mxu0 %v4717_v22 }
 0x200   : > { %v2501_v31 = vpop.f32.mrf.mxu1 }
 0x201   : > { %3075 = vmatpush.bf16.msrb.mxu0 %v4716_v23 }
 0x205   : > { %3076 = vmatpush.bf16.msrb.mxu0 %v4715_v26 }
 0x208   : > { %2759 = vmatmul.bf16.vlgmr.msra.gmra.mxu3 %v5183_v51  ;;  %v4714_v51 = vld [vmem:[%s5335_s7] sm:$0xff]  ;;  %v2570_v49 = vpop.f32.mrf.mxu1 }
 0x209   : > { %3077 = vmatpush.bf16.msrb.mxu0 %v4714_v51 }
 0x20b   : > { %v2513_v19 = vpop.f32.mrf.mxu2 }
 0x210   : > { %v2572_v3 = vpop.f32.mrf.mxu1 }
 0x213   : > { %v2515_v21 = vpop.f32.mrf.mxu2 }
 0x218   : > { %2764 = vmatmul.bf16.gmra.mxu3 %v5190_v58  ;;  %v5241_v58 = vld [vmem:[%s5334_s6] sm:$0xf]  ;;  %v2575_v15 = vpop.f32.mrf.mxu1 }
 0x219   : > { %v1818_v45 = vperm.slane %v5241_v58, 0 }
 0x21b   : > { %v2518_v28 = vpop.f32.mrf.mxu2  ;;  %v2476_v35 = vadd.f32 %v2475_v50, %v1818_v45  ;;  %v2478_v46 = vadd.f32 %v2477_v18, %v1818_v45  ;;  %v2481_v4 = vadd.f32 %v2480_v27, %v1818_v45  ;;  %v2483_v9 = vadd.f32 %v2482_v29, %v1818_v45  ;;  %v4734_v18 = vld [vmem:[%s5335_s7 + $0xa0] sm:$0xff]  ;;  %v4733_v27 = vld [vmem:[%s5335_s7 + $0x98] sm:$0xff] }
 0x21c   : > { %3111 = vmatpush.bf16.msrb.mxu2 %v4734_v18 }
 0x21d   : > { %v2495_v41 = vadd.f32 %v2494_v36, %v2476_v35  ;;  %v2497_v34 = vadd.f32 %v2496_v25, %v2478_v46  ;;  %v2500_v7 = vadd.f32 %v2499_v5, %v2481_v4  ;;  %v2502_v10 = vadd.f32 %v2501_v31, %v2483_v9  ;;  %v4732_v31 = vld [vmem:[%s5335_s7 + $0x90] sm:$0xff] }
 0x21e   : > { %v1819_v36 = vperm.slane %v5241_v58, 1 }
 0x21f   : > { %v2514_v48 = vadd.f32 %v2513_v19, %v2495_v41  ;;  %v2516_v57 = vadd.f32 %v2515_v21, %v2497_v34  ;;  %v2519_v59 = vadd.f32 %v2518_v28, %v2500_v7  ;;  %v2558_v21 = vpop.f32.mrf.mxu0  ;;  %v1820_v7 = vperm.slane %v5241_v58, 2 }
 0x220   : > { %v2552_v23 = vadd.f32 %v2551_v47, %v1819_v36  ;;  %v2577_v5 = vpop.f32.mrf.mxu1  ;;  %v2554_v24 = vadd.f32 %v2553_v63, %v1819_v36  ;;  %3112 = vmatpush.bf16.msrb.mxu2 %v4733_v27 }
 0x222   : > { %v2571_v51 = vadd.f32 %v2570_v49, %v2552_v23  ;;  %v2573_v29 = vadd.f32 %v2572_v3, %v2554_v24  ;;  %v4730_v49 = vld [vmem:[%s5335_s7 + $0x80] sm:$0xff] }
 0x223   : > { %v2520_v32 = vpop.f32.mrf.mxu2 }
 0x224   : > { %v2521_v37 = vadd.f32 %v2520_v32, %v2502_v10  ;;  %3113 = vmatpush.bf16.msrb.mxu2 %v4732_v31  ;;  %v4742_v10 = vld [vmem:[%s5335_s7 + $0xe0] sm:$0xff] }
 0x227   : > { %v2627_v41 = vpop.f32.mrf.mxu0 }
 0x228   : > { %v2646_v47 = vpop.f32.mrf.mxu1  ;;  %v2628_v13 = vadd.f32 %v2627_v41, %v1820_v7 }
 0x22b   : > { %v2532_v39 = vpop.f32.mrf.mxu3  ;;  %v2589_v54 = vpop.f32.mrf.mxu2 }
 0x22c   : > { %v2533_v53 = vadd.f32 %v2532_v39, %v2514_v48  ;;  %v2590_v28 = vadd.f32 %v2589_v54, %v2571_v51  ;;  %v4731_v39 = vld [vmem:[%s5335_s7 + $0x88] sm:$0xff] }
 0x22d   : > { %3114 = vmatpush.bf16.msrb.mxu2 %v4731_v39 }
 0x22e   : > { %v2770_v55 = vmul.f32 0.01, %v2533_v53 }
 0x22f   : > { %v2629_v61 = vpop.f32.mrf.mxu0 }
 0x230   : > { %v2786_v0 = vmax.f32 %v2533_v53, %v2770_v55  ;;  %v2557_v53 = vadd.f32 %v2556_v14, %v1819_v36  ;;  %v2559_v55 = vadd.f32 %v2558_v21, %v1819_v36  ;;  %v2630_v43 = vadd.f32 %v2629_v61, %v1820_v7 }
 0x231   : > { %3115 = vmatpush.bf16.msrb.mxu2 %v4730_v49 }
 0x233   : > { %v2534_v60 = vpop.f32.mrf.mxu3  ;;  %v2591_v6 = vpop.f32.mrf.mxu2 }
 0x234   : > { %v2535_v38 = vadd.f32 %v2534_v60, %v2516_v57  ;;  %v2592_v45 = vadd.f32 %v2591_v6, %v2573_v29  ;;  %v2576_v57 = vadd.f32 %v2575_v15, %v2557_v53  ;;  %v4745_v60 = vld [vmem:[%s5335_s7 + $0xf8] sm:$0xff]  ;;  %v1821_v53 = vperm.slane %v5241_v58, 3 }
 0x235   : > { %3127 = vmatpush.bf16.msrb.mxu3 %v4745_v60 }
 0x236   : > { %v2774_v62 = vmul.f32 0.01, %v2535_v38 }
 0x238   : > { %v2790_v1 = vmax.f32 %v2535_v38, %v2774_v62  ;;  %v2578_v62 = vadd.f32 %v2577_v5, %v2559_v55 }
 0x23a   : > { %v2802_v20 = vpack.c.bf16 %v2790_v1, %v2786_v0  ;;  %v4744_v0 = vld [vmem:[%s5335_s7 + $0xf0] sm:$0xff]  ;;  %v2648_v1 = vpop.f32.mrf.mxu1 }
 0x23b   : > { %v2537_v8 = vpop.f32.mrf.mxu3  ;;  %v2594_v50 = vpop.f32.mrf.mxu2  ;;  %3128 = vmatpush.bf16.msrb.mxu3 %v4744_v0  ;;  %v2649_v36 = vadd.f32 %v2648_v1, %v2630_v43 }
 0x23c   : > { %3078 = vmatmul.bf16.vlgmr.msrb.gmra.mxu0 %v2802_v20  ;;  %v2538_v11 = vadd.f32 %v2537_v8, %v2519_v59  ;;  %v2595_v38 = vadd.f32 %v2594_v50, %v2576_v57  ;;  %v4743_v8 = vld [vmem:[%s5335_s7 + $0xe8] sm:$0xff] }
 0x23e   : > { %v2778_v40 = vmul.f32 0.01, %v2538_v11 }
 0x23f   : > { %3129 = vmatpush.bf16.msrb.mxu3 %v4743_v8 }
 0x240   : > { %v2794_v19 = vmax.f32 %v2538_v11, %v2778_v40  ;;  %v2632_v11 = vpop.f32.mrf.mxu0  ;;  %v4741_v40 = vld [vmem:[%s5335_s7 + $0xd8] sm:$0xff] }
 0x241   : > { %v2633_v29 = vadd.f32 %v2632_v11, %v1820_v7 }
 0x243   : > { %v2539_v16 = vpop.f32.mrf.mxu3  ;;  %v2596_v12 = vpop.f32.mrf.mxu2  ;;  %3130 = vmatpush.bf16.msrb.mxu3 %v4742_v10 }
 0x244   : > { %v2540_v17 = vadd.f32 %v2539_v16, %v2521_v37  ;;  %v2597_v2 = vadd.f32 %v2596_v12, %v2578_v62  ;;  %v2651_v37 = vpop.f32.mrf.mxu1  ;;  %v2647_v16 = vadd.f32 %v2646_v47, %v2628_v13  ;;  %v4738_v12 = vld [vmem:[%s5335_s7 + $0xc0] sm:$0xff] }
 0x246   : > { %v2782_v56 = vmul.f32 0.01, %v2540_v17 }
 0x247   : > { %3131 = vmatpush.bf16.msrb.mxu3 %v4741_v40 }
 0x248   : > { %v2798_v22 = vmax.f32 %v2540_v17, %v2782_v56  ;;  %v2634_v18 = vpop.f32.mrf.mxu0 }
 0x24a   : > { %v2806_v25 = vpack.c.bf16 %v2798_v22, %v2794_v19  ;;  %v4740_v19 = vld [vmem:[%s5335_s7 + $0xd0] sm:$0xff] }
 0x24b   : > { %v2608_v26 = vpop.f32.mrf.mxu3  ;;  %v2665_v34 = vpop.f32.mrf.mxu2  ;;  %3132 = vmatpush.bf16.msrb.mxu3 %v4740_v19 }
 0x24c   : > { %3083 = vmatmul.bf16.gmra.mxu0 %v2806_v25  ;;  %v2609_v30 = vadd.f32 %v2608_v26, %v2590_v28  ;;  %v2666_v50 = vadd.f32 %v2665_v34, %v2647_v16  ;;  %v4739_v26 = vld [vmem:[%s5335_s7 + $0xc8] sm:$0xff]  ;;  %v2653_v51 = vpop.f32.mrf.mxu1 }
 0x24e   : > { %v2771_v33 = vmul.f32 0.01, %v2609_v30 }
 0x24f   : > { %3133 = vmatpush.bf16.msrb.mxu3 %v4739_v26 }
 0x250   : > { %v2787_v46 = vmax.f32 %v2609_v30, %v2771_v33  ;;  %v2635_v33 = vadd.f32 %v2634_v18, %v1820_v7 }
 0x252   : > { %v2654_v41 = vadd.f32 %v2653_v51, %v2635_v33 }
 0x253   : > { %v2610_v32 = vpop.f32.mrf.mxu3  ;;  %v2667_v3 = vpop.f32.mrf.mxu2  ;;  %3134 = vmatpush.bf16.msrb.mxu3 %v4738_v12 }
 0x254   : > { %v2611_v35 = vadd.f32 %v2610_v32, %v2592_v45  ;;  %v2668_v22 = vadd.f32 %v2667_v3, %v2649_v36  ;;  %v2652_v45 = vadd.f32 %v2651_v37, %v2633_v29  ;;  %v2703_v32 = vpop.f32.mrf.mxu0  ;;  %v2722_v39 = vpop.f32.mrf.mxu1 }
 0x256   : > { %v2775_v44 = vmul.f32 0.01, %v2611_v35 }
 0x258   : > { %v2791_v48 = vmax.f32 %v2611_v35, %v2775_v44 }
 0x25a   : > { %v2803_v42 = vpack.c.bf16 %v2791_v48, %v2787_v46 }
 0x25b   : > { %v2613_v54 = vpop.f32.mrf.mxu3  ;;  %v2670_v17 = vpop.f32.mrf.mxu2 }
 0x25c   : > { %3097 = vmatmul.bf16.vlgmr.msrb.gmra.mxu1 %v2803_v42  ;;  %v2614_v63 = vadd.f32 %v2613_v54, %v2595_v38  ;;  %v2671_v35 = vadd.f32 %v2670_v17, %v2652_v45  ;;  %v2705_v54 = vpop.f32.mrf.mxu0  ;;  %v2724_v55 = vpop.f32.mrf.mxu1  ;;  %v2704_v38 = vadd.f32 %v2703_v32, %v1821_v53 }
 0x25d   : > { %v2706_v1 = vadd.f32 %v2705_v54, %v1821_v53 }
 0x25e   : > { %v2779_v20 = vmul.f32 0.01, %v2614_v63  ;;  %v2723_v0 = vadd.f32 %v2722_v39, %v2704_v38 }
 0x25f   : > { %v2725_v3 = vadd.f32 %v2724_v55, %v2706_v1 }
 0x260   : > { %v2795_v9 = vmax.f32 %v2614_v63, %v2779_v20 }
 0x263   : > { %v2615_v4 = vpop.f32.mrf.mxu3  ;;  %v2672_v5 = vpop.f32.mrf.mxu2 }
 0x264   : > { %v2616_v6 = vadd.f32 %v2615_v4, %v2597_v2  ;;  %v2673_v46 = vadd.f32 %v2672_v5, %v2654_v41  ;;  %v2708_v20 = vpop.f32.mrf.mxu0  ;;  %v2727_v8 = vpop.f32.mrf.mxu1 }
 0x265   : > { %v2709_v13 = vadd.f32 %v2708_v20, %v1821_v53 }
 0x266   : > { %v2783_v52 = vmul.f32 0.01, %v2616_v6 }
 0x267   : > { %v2728_v16 = vadd.f32 %v2727_v8, %v2709_v13 }
 0x268   : > { %v2799_v59 = vmax.f32 %v2616_v6, %v2783_v52 }
 0x26a   : > { %v2807_v14 = vpack.c.bf16 %v2799_v59, %v2795_v9 }
 0x26b   : > { %v2684_v15 = vpop.f32.mrf.mxu3  ;;  %v2741_v47 = vpop.f32.mrf.mxu2 }
 0x26c   : > { %3102 = vmatmul.bf16.gmra.mxu1 %v2807_v14  ;;  %v2685_v56 = vadd.f32 %v2684_v15, %v2666_v50  ;;  %v2742_v2 = vadd.f32 %v2741_v47, %v2723_v0  ;;  %v2710_v37 = vpop.f32.mrf.mxu0  ;;  %v2729_v40 = vpop.f32.mrf.mxu1 }
 0x26d   : > { %v2711_v17 = vadd.f32 %v2710_v37, %v1821_v53 }
 0x26e   : > { %v2772_v25 = vmul.f32 0.01, %v2685_v56 }
 0x26f   : > { %v2730_v36 = vadd.f32 %v2729_v40, %v2711_v17 }
 0x270   : > { %v2788_v24 = vmax.f32 %v2685_v56, %v2772_v25 }
 0x273   : > { %v2686_v23 = vpop.f32.mrf.mxu3  ;;  %v2743_v62 = vpop.f32.mrf.mxu2 }
 0x274   : > { %v2687_v21 = vadd.f32 %v2686_v23, %v2668_v22  ;;  %v2744_v6 = vadd.f32 %v2743_v62, %v2725_v3 }
 0x276   : > { %v2776_v27 = vmul.f32 0.01, %v2687_v21 }
 0x278   : > { %v2792_v28 = vmax.f32 %v2687_v21, %v2776_v27 }
 0x27a   : > { %v2804_v30 = vpack.c.bf16 %v2792_v28, %v2788_v24  ;;  %v4777_v28 = vld [vmem:[%s5336_s8] ss:$0 sm:$0xff] }
 0x27b   : > { %v2689_v31 = vpop.f32.mrf.mxu3  ;;  %v2746_v9 = vpop.f32.mrf.mxu2 }
 0x27c   : > { %3116 = vmatmul.bf16.vlgmr.msrb.gmra.mxu2 %v2804_v30  ;;  %v2690_v44 = vadd.f32 %v2689_v31, %v2671_v35  ;;  %v2747_v43 = vadd.f32 %v2746_v9, %v2728_v16 }
 0x27e   : > { %v2780_v49 = vmul.f32 0.01, %v2690_v44 }
 0x280   : > { %v2796_v57 = vmax.f32 %v2690_v44, %v2780_v49 }
 0x283   : > { %v2691_v48 = vpop.f32.mrf.mxu3  ;;  %v2748_v50 = vpop.f32.mrf.mxu2 }
 0x284   : > { %v2692_v34 = vadd.f32 %v2691_v48, %v2673_v46  ;;  %v2749_v19 = vadd.f32 %v2748_v50, %v2730_v36 }
 0x286   : > { %v2784_v42 = vmul.f32 0.01, %v2692_v34 }
 0x288   : > { %v2800_v60 = vmax.f32 %v2692_v34, %v2784_v42 }
 0x28a   : > { %v2808_v61 = vpack.c.bf16 %v2800_v60, %v2796_v57 }
 0x28b   : > { %v2760_v63 = vpop.f32.mrf.mxu3 }
 0x28c   : > { %3121 = vmatmul.bf16.gmra.mxu2 %v2808_v61  ;;  %v2761_v4 = vadd.f32 %v2760_v63, %v2742_v2 }
 0x28e   : > { %v2773_v58 = vmul.f32 0.01, %v2761_v4 }
 0x290   : > { %v2789_v10 = vmax.f32 %v2761_v4, %v2773_v58 }
 0x293   : > { %v2762_v7 = vpop.f32.mrf.mxu3 }
 0x294   : > { %v2763_v52 = vadd.f32 %v2762_v7, %v2744_v6 }
 0x296   : > { %v2777_v59 = vmul.f32 0.01, %v2763_v52 }
 0x298   : > { %v2793_v11 = vmax.f32 %v2763_v52, %v2777_v59 }
 0x29a   : > { %v2805_v14 = vpack.c.bf16 %v2793_v11, %v2789_v10 }
 0x29b   : > { %v2765_v15 = vpop.f32.mrf.mxu3 }
 0x29c   : > { %3135 = vmatmul.bf16.vlgmr.msrb.gmra.mxu3 %v2805_v14  ;;  %v2766_v56 = vadd.f32 %v2765_v15, %v2747_v43 }
 0x29e   : > { %v2781_v18 = vmul.f32 0.01, %v2766_v56 }
 0x2a0   : > { %v2797_v21 = vmax.f32 %v2766_v56, %v2781_v18 }
 0x2a3   : > { %v2767_v22 = vpop.f32.mrf.mxu3 }
 0x2a4   : > { %v2768_v23 = vadd.f32 %v2767_v22, %v2749_v19 }
 0x2a6   : > { %v2785_v25 = vmul.f32 0.01, %v2768_v23 }
 0x2a8   : > { %v2801_v26 = vmax.f32 %v2768_v23, %v2785_v25 }
 0x2aa   : > { %v2809_v51 = vpack.c.bf16 %v2801_v26, %v2797_v21 }
 0x2ac   : > { %3140 = vmatmul.bf16.gmra.mxu3 %v2809_v51 }
 0x2b9   : > { %v3079_v27 = vpop.f32.mrf.mxu0 }
 0x2ba   : > { %v3080_v12 = vadd.f32 %v4777_v28, %v3079_v27 }
 0x2c1   : > { %v3081_v29 = vpop.f32.mrf.mxu0 }
 0x2c2   : > { %v3082_v39 = vadd.f32 %v4777_v28, %v3081_v29 }
 0x2c9   : > { %v3084_v47 = vpop.f32.mrf.mxu0 }
 0x2ca   : > { %v3085_v42 = vadd.f32 %v4777_v28, %v3084_v47 }
 0x2d1   : > { %v3086_v55 = vpop.f32.mrf.mxu0 }
 0x2d2   : > { %v3087_v63 = vadd.f32 %v4777_v28, %v3086_v55 }
 0x2d9   : > { %v3098_v5 = vpop.f32.mrf.mxu1 }
 0x2da   : > { %v3099_v30 = vadd.f32 %v3098_v5, %v3080_v12 }
 0x2e1   : > { %v3100_v31 = vpop.f32.mrf.mxu1 }
 0x2e2   : > { %v3101_v44 = vadd.f32 %v3100_v31, %v3082_v39 }
 0x2e9   : > { %v3103_v48 = vpop.f32.mrf.mxu1 }
 0x2ea   : > { %v3104_v57 = vadd.f32 %v3103_v48, %v3085_v42 }
 0x2f1   : > { %v3105_v62 = vpop.f32.mrf.mxu1 }
 0x2f2   : > { %v3106_v2 = vadd.f32 %v3105_v62, %v3087_v63 }
 0x2ff   : > { %v3117_v24 = vpop.f32.mrf.mxu2 }
 0x300   : > { %v3118_v45 = vadd.f32 %v3117_v24, %v3099_v30 }
 0x307   : > { %v3119_v32 = vpop.f32.mrf.mxu2 }
 0x308   : > { %v3120_v46 = vadd.f32 %v3119_v32, %v3101_v44 }
 0x30f   : > { %v3122_v53 = vpop.f32.mrf.mxu2 }
 0x310   : > { %v3123_v60 = vadd.f32 %v3122_v53, %v3104_v57 }
 0x317   : > { %v3124_v1 = vpop.f32.mrf.mxu2 }
 0x318   : > { %v3125_v3 = vadd.f32 %v3124_v1, %v3106_v2 }
 0x31f   : > { %v3136_v33 = vpop.f32.mrf.mxu3 }
 0x320   : > { %v3137_v35 = vadd.f32 %v3136_v33, %v3118_v45 }
 0x322   : > { %v3146_v41 = vpack.c.bf16 %v3137_v35, %v3137_v35 }
 0x324   : > { %3151 = vst.msk [vmem:[%s368_s28] sm:$0xf] %vm3150_vm1, %v3146_v41 }
 0x327   : > { %v3138_v49 = vpop.f32.mrf.mxu3 }
 0x328   : > { %v3139_v34 = vadd.f32 %v3138_v49, %v3120_v46 }
 0x32a   : > { %v3147_v54 = vpack.c.bf16 %v3139_v34, %v3139_v34 }
 0x32c   : > { %3152 = vst.msk [vmem:[%s368_s28 + $0x4] sm:$0xf] %vm3150_vm1, %v3147_v54 }
 0x32f   : > { %v3141_v38 = vpop.f32.mrf.mxu3 }
 0x330   : > { %v3142_v61 = vadd.f32 %v3141_v38, %v3123_v60 }
 0x332   : > { %v3148_v0 = vpack.c.bf16 %v3142_v61, %v3142_v61 }
 0x334   : > { %3153 = vst.msk [vmem:[%s368_s28 + $0x8] sm:$0xf] %vm3150_vm1, %v3148_v0 }
 0x337   : > { %v3143_v4 = vpop.f32.mrf.mxu3 }
 0x338   : > { %v3144_v20 = vadd.f32 %v3143_v4, %v3125_v3 }
 0x33a   : > { %v3149_v6 = vpack.c.bf16 %v3144_v20, %v3144_v20 }
 0x33c   : > { %3154 = vst.msk [vmem:[%s368_s28 + $0xc] sm:$0xf] %vm3150_vm1, %v3149_v6 }
 0x33d PF: > { %s21_s30 = sadd.s32 1, %s4852_s30  }
 0x33e   : > { %p18_p7 = scmp.ge.s32.totalorder %s21_s30, 4  }
 0x340   :  { %20 = sbr.rel (!%p18_p7) target bundleno = 2 (0x2), region = 95 }
 0x345   :  { %3177 = vsyncpa [#allocation3], 1 }
 0x346   :  { %3179 = vsyncpa [#allocation3 + $0x1], 1 }
 0x347   :  { %3180 = vsyncpa [#allocation5], 1 }

</bundles_post_ra>
